<compile_context>
chip_gen: v6e
topology: v6e:2x2x1
jax: 0.10.0
libtpu: 0.0.40
codegen_flags: <defaults>
</compile_context>

<pallas_src>
import functools

import jax
import jax.numpy as jnp
from jax.experimental import pallas as pl
from jax.experimental.pallas import tpu as pltpu

PACK = 8  # rows packed per lane-dense streamed row (8 * 48 = 384 = 3 * 128 lanes)


def autoencoder_kernel(x_ref,
                       w1_ref, b1_ref,     # encoder Linear(in->hidden) + ReLU   (block-diag)
                       w23_ref, b23_ref,   # fused Linear(hidden->enc)@(enc->hidden) + ReLU
                       w4_ref, b4_ref,     # decoder Linear(hidden->in)          (block-diag)
                       out_ref):
    # Hoist bias reads (once per grid step; broadcast happens in the adds).
    b1 = b1_ref[...]
    b23 = b23_ref[...]
    b4 = b4_ref[...]

    x = x_ref[...]

    # Layer 1 + ReLU (f32 accumulate on the MXU, f32 elementwise).
    h = jnp.dot(x, w1_ref[...], preferred_element_type=jnp.float32,
                precision=jax.lax.Precision.HIGHEST) + b1
    h = jnp.maximum(h, 0.0)

    # Fused middle layers (8->2->8, no activation in between) + ReLU.
    d = jnp.dot(h, w23_ref[...], preferred_element_type=jnp.float32,
                precision=jax.lax.Precision.HIGHEST) + b23
    d = jnp.maximum(d, 0.0)

    # Final decoder layer.
    y = jnp.dot(d, w4_ref[...], preferred_element_type=jnp.float32,
                precision=jax.lax.Precision.HIGHEST) + b4

    out_ref[...] = y.astype(out_ref.dtype)


def _block_diag(w, n):
    """blockdiag(w, ..., w) with n copies; w is (fin, fout) -> (n*fin, n*fout)."""
    fin, fout = w.shape
    eye = jnp.eye(n, dtype=w.dtype)
    return (eye[:, None, :, None] * w[None, :, None, :]).reshape(n * fin, n * fout)


def autoencoder_forward(x, params, *, block_rows=None):
    """Autoencoder forward pass as one batch-tiled, lane-dense Pallas kernel.

    x: (B, input_dim) f32 or bf16.
    params: dict with w1..w4 stored as (in, out) and b1..b4 as (1, out).
    """
    B, input_dim = x.shape
    hidden_dim = params["w1"].shape[1]
    compute_dtype = x.dtype

    # ---- wrapper-side weight prep (tiny; runs once under jit) -----------------
    # Algebraic fusion of the activation-free middle layers:
    #   (h @ w2 + b2) @ w3 + b3 == h @ (w2 @ w3) + (b2 @ w3 + b3)
    # TODO(synk): gate this fusion if the model ever adds an activation on the
    # 2-d code or a final output nonlinearity.
    w2 = params["w2"].astype(jnp.float32)
    w3 = params["w3"].astype(jnp.float32)
    w23 = jnp.dot(w2, w3, precision="highest")                                  # (hid, hid)
    b23 = (jnp.dot(params["b2"].astype(jnp.float32), w3, precision="highest")
           + params["b3"].astype(jnp.float32))                                  # (1, hid)

    # Block-diagonal, lane-dense weights for the packed (.., 8*input_dim) layout.
    w1_bd = _block_diag(params["w1"].astype(jnp.float32), PACK).astype(compute_dtype)  # (384, 64)
    w23_bd = _block_diag(w23, PACK).astype(compute_dtype)                               # (64, 64)
    w4_bd = _block_diag(params["w4"].astype(jnp.float32), PACK).astype(compute_dtype)   # (64, 384)
    b1_t = jnp.tile(params["b1"].astype(jnp.float32), (1, PACK))                        # (1, 64)
    b23_t = jnp.tile(b23, (1, PACK))                                                     # (1, 64)
    b4_t = jnp.tile(params["b4"].astype(jnp.float32), (1, PACK))                         # (1, 384)

    # ---- packed (lane-dense) batch view ---------------------------------------
    Bp = ((B + PACK - 1) // PACK) * PACK
    if Bp != B:
        # Only pads up to 7 rows (needed for the free packed view); tile-boundary
        # raggedness below is handled by Pallas without any padding copy.
        x = jnp.pad(x, ((0, Bp - B), (0, 0)))
    R = Bp // PACK
    packed_in = PACK * input_dim     # 384
    packed_hid = PACK * hidden_dim   # 64
    x_packed = x.reshape(R, packed_in)   # free row-major view

    # ---- batch tile (in packed rows) ------------------------------------------
    if block_rows is None:
        # Double-buffered x+out blocks stay ~12 MiB -> under v5e's 16 MiB
        # scoped-VMEM default (and well under v6e/v7x); raise for more headroom
        # together with pltpu.CompilerParams(vmem_limit_bytes=...) if desired.
        block_rows = 4096 if compute_dtype.itemsize <= 2 else 2048
    block_rows = max(8, (block_rows // 8) * 8)
    tr = R if R < 8 else min(block_rows, (R // 8) * 8)
    grid = (pl.cdiv(R, tr),)   # ragged trailing block handled (masked) by Pallas

    def batch_map(i):
        return (i, 0)

    def resident_map(i):       # weights/biases stay resident in VMEM across steps
        return (0, 0)

    flops = 2 * R * (packed_in * packed_hid + packed_hid * packed_hid
                     + packed_hid * packed_in)
    bytes_accessed = (2 * R * packed_in * compute_dtype.itemsize
                      + (w1_bd.size + w23_bd.size + w4_bd.size) * compute_dtype.itemsize
                      + (b1_t.size + b23_t.size + b4_t.size) * 4)

    out = pl.pallas_call(
        autoencoder_kernel,
        out_shape=jax.ShapeDtypeStruct((R, packed_in), compute_dtype),
        grid=grid,
        in_specs=[
            pl.BlockSpec((tr, packed_in), batch_map),     # x (streamed, lane-dense)
            pl.BlockSpec(w1_bd.shape, resident_map),      # W1 block-diag
            pl.BlockSpec(b1_t.shape, resident_map),       # b1 tiled
            pl.BlockSpec(w23_bd.shape, resident_map),     # fused W2@W3 block-diag
            pl.BlockSpec(b23_t.shape, resident_map),      # fused bias tiled
            pl.BlockSpec(w4_bd.shape, resident_map),      # W4 block-diag
            pl.BlockSpec(b4_t.shape, resident_map),       # b4 tiled
        ],
        out_specs=pl.BlockSpec((tr, packed_in), batch_map),
        compiler_params=pltpu.CompilerParams(
            dimension_semantics=("parallel",)),
        cost_estimate=pl.CostEstimate(
            flops=flops, transcendentals=0, bytes_accessed=bytes_accessed),
    )(x_packed, w1_bd, b1_t, w23_bd, b23_t, w4_bd, b4_t)

    out = out.reshape(Bp, input_dim)
    return out[:B] if Bp != B else out


def init_params(key, input_dim=48, encoding_dim=2, hidden_dim=8):
    """Deterministic init mimicking PyTorch Linear's uniform(-1/sqrt(fan_in), +)."""
    def linear(k, fan_in, fan_out):
        kw, kb = jax.random.split(k)
        bound = 1.0 / jnp.sqrt(fan_in)
        w = jax.random.uniform(kw, (fan_in, fan_out), jnp.float32, -bound, bound)  # (in, out)
        b = jax.random.uniform(kb, (1, fan_out), jnp.float32, -bound, bound)
        return w, b

    k1, k2, k3, k4 = jax.random.split(key, 4)
    w1, b1 = linear(k1, input_dim, hidden_dim)
    w2, b2 = linear(k2, hidden_dim, encoding_dim)
    w3, b3 = linear(k3, encoding_dim, hidden_dim)
    w4, b4 = linear(k4, hidden_dim, input_dim)
    return dict(w1=w1, b1=b1, w2=w2, b2=b2, w3=w3, b3=b3, w4=w4, b4=b4)


def reference_forward(x, p):
    """Pure-JAX reference of the original (unfused, unpacked) forward pass."""
    h = jnp.maximum(jnp.dot(x, p["w1"], precision="highest") + p["b1"], 0.0)
    z = jnp.dot(h, p["w2"], precision="highest") + p["b2"]
    d = jnp.maximum(jnp.dot(z, p["w3"], precision="highest") + p["b3"], 0.0)
    return jnp.dot(d, p["w4"], precision="highest") + p["b4"]


if __name__ == "__main__":
    key = jax.random.PRNGKey(0)
    kx, kp = jax.random.split(key)

    B, input_dim, encoding_dim, hidden_dim = 32, 48, 2, 8
    x = jax.random.normal(kx, (B, input_dim), dtype=jnp.float32)
    params = init_params(kp, input_dim, encoding_dim, hidden_dim)

    fwd = jax.jit(functools.partial(autoencoder_forward))
    out = jax.block_until_ready(fwd(x, params))

    ref = reference_forward(x, params)
    assert out.shape == (B, input_dim), out.shape
    assert jnp.allclose(out, ref, atol=1e-4, rtol=1e-4), "mismatch vs reference (f32)"

    # Ragged batch (B % 8 != 0) -> small pad-to-8 path.
    x2 = jax.random.normal(kx, (13, input_dim), dtype=jnp.float32)
    out2 = jax.block_until_ready(autoencoder_forward(x2, params))
    assert jnp.allclose(out2, reference_forward(x2, params), atol=1e-4, rtol=1e-4)

    # Partial trailing grid block (R=13 packed rows, tile=8 -> 2 steps, last masked).
    x3 = jax.random.normal(kx, (104, input_dim), dtype=jnp.float32)
    out3 = jax.block_until_ready(autoencoder_forward(x3, params, block_rows=8))
    assert jnp.allclose(out3, reference_forward(x3, params), atol=1e-4, rtol=1e-4)

    # bf16 I/O path (halves HBM bytes; accumulation stays f32) -> loose tolerance.
    xb = x.astype(jnp.bfloat16)
    outb = jax.block_until_ready(autoencoder_forward(xb, params))
    assert outb.dtype == jnp.bfloat16
    assert jnp.allclose(outb.astype(jnp.float32), ref, atol=1e-1, rtol=1e-1)

    print("KERNEL_OK")
</pallas_src>

<mosaic_0001>
module attributes {stable_mosaic.version = 11 : i64} {
  func.func @autoencoder_kernel(%arg0: i32, %arg1: memref<4x384xf32, #tpu.memory_space<vmem>>, %arg2: memref<384x64xf32, #tpu.memory_space<vmem>>, %arg3: memref<1x64xf32, #tpu.memory_space<vmem>>, %arg4: memref<64x64xf32, #tpu.memory_space<vmem>>, %arg5: memref<1x64xf32, #tpu.memory_space<vmem>>, %arg6: memref<64x384xf32, #tpu.memory_space<vmem>>, %arg7: memref<1x384xf32, #tpu.memory_space<vmem>>, %arg8: memref<4x384xf32, #tpu.memory_space<vmem>>) attributes {dimension_semantics = [#tpu.dimension_semantics<parallel>], iteration_bounds = array<i64: 1>, scalar_prefetch = 0 : i64, scratch_operands = 0 : i64, tpu.core_type = #tpu.core_type<tc>, window_params = [{transform_indices = @transform_0, window_bounds = array<i64: 4, 384>}, {pipeline_mode = #tpu.pipeline_mode<synchronous>, transform_indices = @transform_1, window_bounds = array<i64: 384, 64>}, {pipeline_mode = #tpu.pipeline_mode<synchronous>, transform_indices = @transform_2, window_bounds = array<i64: 1, 64>}, {pipeline_mode = #tpu.pipeline_mode<synchronous>, transform_indices = @transform_3, window_bounds = array<i64: 64, 64>}, {pipeline_mode = #tpu.pipeline_mode<synchronous>, transform_indices = @transform_4, window_bounds = array<i64: 1, 64>}, {pipeline_mode = #tpu.pipeline_mode<synchronous>, transform_indices = @transform_5, window_bounds = array<i64: 64, 384>}, {pipeline_mode = #tpu.pipeline_mode<synchronous>, transform_indices = @transform_6, window_bounds = array<i64: 1, 384>}, {transform_indices = @transform_7, window_bounds = array<i64: 4, 384>}]} {
    %c0 = arith.constant 0 : index
    %c0_0 = arith.constant 0 : index
    %0 = vector.load %arg3[%c0, %c0_0] : memref<1x64xf32, #tpu.memory_space<vmem>>, vector<1x64xf32>
    %c0_1 = arith.constant 0 : index
    %c0_2 = arith.constant 0 : index
    %1 = vector.load %arg5[%c0_1, %c0_2] : memref<1x64xf32, #tpu.memory_space<vmem>>, vector<1x64xf32>
    %c0_3 = arith.constant 0 : index
    %c0_4 = arith.constant 0 : index
    %2 = vector.load %arg7[%c0_3, %c0_4] : memref<1x384xf32, #tpu.memory_space<vmem>>, vector<1x384xf32>
    %c0_5 = arith.constant 0 : index
    %c0_6 = arith.constant 0 : index
    %3 = vector.load %arg1[%c0_5, %c0_6] : memref<4x384xf32, #tpu.memory_space<vmem>>, vector<4x384xf32>
    %c0_7 = arith.constant 0 : index
    %c0_8 = arith.constant 0 : index
    %4 = vector.load %arg2[%c0_7, %c0_8] : memref<384x64xf32, #tpu.memory_space<vmem>>, vector<384x64xf32>
    %cst = arith.constant dense<0.000000e+00> : vector<4x64xf32>
    %5 = tpu.matmul %3, %4, %cst {dimension_numbers = #tpu.dot_dimension_numbers<[1], [0], [0], [1], [0, 0, 1, 1], [], []>, precision = #tpu.contract_precision<fp32>} : vector<4x384xf32>, vector<384x64xf32>, vector<4x64xf32> -> vector<4x64xf32>
    %6 = vector.broadcast %0 : vector<1x64xf32> to vector<4x64xf32>
    %7 = arith.addf %5, %6 : vector<4x64xf32>
    %cst_9 = arith.constant 0.000000e+00 : f32
    %8 = vector.broadcast %cst_9 : f32 to vector<4x64xf32>
    %9 = arith.maximumf %7, %8 : vector<4x64xf32>
    %c0_10 = arith.constant 0 : index
    %c0_11 = arith.constant 0 : index
    %10 = vector.load %arg4[%c0_10, %c0_11] : memref<64x64xf32, #tpu.memory_space<vmem>>, vector<64x64xf32>
    %cst_12 = arith.constant dense<0.000000e+00> : vector<4x64xf32>
    %11 = tpu.matmul %9, %10, %cst_12 {dimension_numbers = #tpu.dot_dimension_numbers<[1], [0], [0], [1], [0, 0, 1, 1], [], []>, precision = #tpu.contract_precision<fp32>} : vector<4x64xf32>, vector<64x64xf32>, vector<4x64xf32> -> vector<4x64xf32>
    %12 = vector.broadcast %1 : vector<1x64xf32> to vector<4x64xf32>
    %13 = arith.addf %11, %12 : vector<4x64xf32>
    %cst_13 = arith.constant 0.000000e+00 : f32
    %14 = vector.broadcast %cst_13 : f32 to vector<4x64xf32>
    %15 = arith.maximumf %13, %14 : vector<4x64xf32>
    %c0_14 = arith.constant 0 : index
    %c0_15 = arith.constant 0 : index
    %16 = vector.load %arg6[%c0_14, %c0_15] : memref<64x384xf32, #tpu.memory_space<vmem>>, vector<64x384xf32>
    %cst_16 = arith.constant dense<0.000000e+00> : vector<4x384xf32>
    %17 = tpu.matmul %15, %16, %cst_16 {dimension_numbers = #tpu.dot_dimension_numbers<[1], [0], [0], [1], [0, 0, 1, 1], [], []>, precision = #tpu.contract_precision<fp32>} : vector<4x64xf32>, vector<64x384xf32>, vector<4x384xf32> -> vector<4x384xf32>
    %18 = vector.broadcast %2 : vector<1x384xf32> to vector<4x384xf32>
    %19 = arith.addf %17, %18 : vector<4x384xf32>
    %c0_17 = arith.constant 0 : index
    %c0_18 = arith.constant 0 : index
    %20 = vector.load %arg8[%c0_17, %c0_18] : memref<4x384xf32, #tpu.memory_space<vmem>>, vector<4x384xf32>
    tpu.vector_store %arg8[%c0_17, %c0_18], %19 {strides = array<i32>} : memref<4x384xf32, #tpu.memory_space<vmem>>, vector<4x384xf32>,
    return
  }
  func.func @transform_0(%arg0: i32) -> (i32, i32) {
    %c0_i32 = arith.constant 0 : i32
    %c0_i32_0 = arith.constant 0 : i32
    return %arg0, %c0_i32 : i32, i32
  }
  func.func @transform_1(%arg0: i32) -> (i32, i32) {
    %c0_i32 = arith.constant 0 : i32
    %c0_i32_0 = arith.constant 0 : i32
    %c0_i32_1 = arith.constant 0 : i32
    return %c0_i32, %c0_i32_0 : i32, i32
  }
  func.func @transform_2(%arg0: i32) -> (i32, i32) {
    %c0_i32 = arith.constant 0 : i32
    %c0_i32_0 = arith.constant 0 : i32
    %c0_i32_1 = arith.constant 0 : i32
    return %c0_i32, %c0_i32_0 : i32, i32
  }
  func.func @transform_3(%arg0: i32) -> (i32, i32) {
    %c0_i32 = arith.constant 0 : i32
    %c0_i32_0 = arith.constant 0 : i32
    %c0_i32_1 = arith.constant 0 : i32
    return %c0_i32, %c0_i32_0 : i32, i32
  }
  func.func @transform_4(%arg0: i32) -> (i32, i32) {
    %c0_i32 = arith.constant 0 : i32
    %c0_i32_0 = arith.constant 0 : i32
    %c0_i32_1 = arith.constant 0 : i32
    return %c0_i32, %c0_i32_0 : i32, i32
  }
  func.func @transform_5(%arg0: i32) -> (i32, i32) {
    %c0_i32 = arith.constant 0 : i32
    %c0_i32_0 = arith.constant 0 : i32
    %c0_i32_1 = arith.constant 0 : i32
    return %c0_i32, %c0_i32_0 : i32, i32
  }
  func.func @transform_6(%arg0: i32) -> (i32, i32) {
    %c0_i32 = arith.constant 0 : i32
    %c0_i32_0 = arith.constant 0 : i32
    %c0_i32_1 = arith.constant 0 : i32
    return %c0_i32, %c0_i32_0 : i32, i32
  }
  func.func @transform_7(%arg0: i32) -> (i32, i32) {
    %c0_i32 = arith.constant 0 : i32
    %c0_i32_0 = arith.constant 0 : i32
    return %arg0, %c0_i32 : i32, i32
  }
}

</mosaic_0001>

<bundles_post_ra>
// kernel: autoencoder_forward.1
= control target key start
LH: loop header
LB: loop body
LE: loop exit
PB: predicated region body
PF: predicated region fallthrough
CT: control target
= control target key end

     0   :  { %vm4249_vm0 = vmmov 0   ;;  %vm1606_vm1 = vcmask 523264   ;;  %s6157_s1 = inlined_call_operand.vmem [shape: f32[384,64], index: 1, kind: input, shape index: {}]   ;;  %s6158_s0 = inlined_call_operand.vmem [shape: f32[4,384], index: 0, kind: input, shape index: {}]   ;;  %s6159_s2 = inlined_call_operand.vmem [shape: f32[1,64], index: 2, kind: input, shape index: {}]   ;;  %s6160_s3 = inlined_call_operand.vmem [shape: f32[64,64], index: 3, kind: input, shape index: {}]   ;;  %s6161_s5 = inlined_call_operand.vmem [shape: f32[64,384], index: 5, kind: input, shape index: {}]   ;;  %s6162_s4 = inlined_call_operand.vmem [shape: f32[1,64], index: 4, kind: input, shape index: {}]   ;;  %s6163_s6 = inlined_call_operand.vmem [shape: f32[1,384], index: 6, kind: input, shape index: {}]   ;;  %s6164_s7 = inlined_call_operand.vmem [shape: f32[4,384], index: 7, kind: output, shape index: {}]  }
   0x1   :  { %v62_v0 = vld [vmem:[%s6157_s1 + $0xf8] sm:$0xff]  ;;  %v61_v2 = vld [vmem:[%s6157_s1 + $0xf0] sm:$0xff]  ;;  %v60_v7 = vld [vmem:[%s6157_s1 + $0xe8] sm:$0xff] }
   0x2   :  { %v46_v1 = vld [vmem:[%s6157_s1 + $0x78] sm:$0xff]  ;;  %v4299_v3 = vand.u32 4294901760, %v62_v0  ;;  %v4303_v5 = vand.u32 4294901760, %v61_v2  ;;  %v45_v6 = vld [vmem:[%s6157_s1 + $0x70] sm:$0xff]  ;;  %v44_v8 = vld [vmem:[%s6157_s1 + $0x68] sm:$0xff]  ;;  %v4316_v10 = vand.u32 4294901760, %v60_v7 }
   0x3   :  { %v4301_v4 = vand.u32 4294901760, %v46_v1  ;;  %v4314_v9 = vand.u32 4294901760, %v45_v6  ;;  %v4318_v11 = vand.u32 4294901760, %v44_v8  ;;  %v59_v12 = vld [vmem:[%s6157_s1 + $0xe0] sm:$0xff]  ;;  %v58_v14 = vld [vmem:[%s6157_s1 + $0xd8] sm:$0xff]  ;;  %v4347_v20 = vld [vmem:[%s6157_s1 + $0xd0] sm:$0xff] }
   0x4   :  { %v43_v13 = vld [vmem:[%s6157_s1 + $0x60] sm:$0xff]  ;;  %3387 = vmatprep.subr.mxu0 %v4299_v3  ;;  %v4330_v15 = vand.u32 4294901760, %v59_v12  ;;  %v4334_v17 = vand.u32 4294901760, %v58_v14  ;;  %v4337_v18 = vsub.f32 %v62_v0, %v4299_v3  ;;  %v4342_v19 = vld [vmem:[%s6157_s1 + $0x58] sm:$0xff]  ;;  %v4352_v21 = vld [vmem:[%s6157_s1 + $0x50] sm:$0xff]  ;;  %v4362_v24 = vand.u32 4294901760, %v4347_v20 }
   0x5   :  { %v4332_v16 = vand.u32 4294901760, %v43_v13  ;;  %3388 = vmatpush3.msra.mxu0 %v4301_v4  ;;  %v4356_v22 = vand.u32 4294901760, %v4342_v19  ;;  %v4359_v23 = vsub.f32 %v46_v1, %v4301_v4  ;;  %v4365_v25 = vsub.f32 %v61_v2, %v4303_v5  ;;  %v4370_v26 = vld [vmem:[%s6157_s1 + $0xc8] sm:$0xff]  ;;  %v4380_v28 = vld [vmem:[%s6157_s1 + $0xc0] sm:$0xff]  ;;  %v4432_v46 = vld [vmem:[%s6157_s1 + $0xb8] sm:$0xff] }
   0x6   :  { %v4375_v27 = vld [vmem:[%s6157_s1 + $0x48] sm:$0xff]  ;;  %3389 = vmatprep.subr.mxu0 %v4303_v5  ;;  %v6178_v29 = vand.u32 4294901760, %v4337_v18  ;;  %v4385_v30 = vand.u32 4294901760, %v4352_v21  ;;  %v4388_v31 = vsub.f32 %v45_v6, %v4314_v9  ;;  %v4391_v32 = vand.u32 4294901760, %v4370_v26  ;;  %v4405_v37 = vld [vmem:[%s6157_s1 + $0x40] sm:$0xff]  ;;  %v4445_v51 = vld [vmem:[%s6157_s1 + $0x38] sm:$0xff] }
   0x7   :  { %3390 = vmatpush3.msra.mxu0 %v4314_v9  ;;  %v6177_v33 = vand.u32 4294901760, %v4359_v23  ;;  %v6175_v34 = vand.u32 4294901760, %v4365_v25  ;;  %v4397_v35 = vsub.f32 %v60_v7, %v4316_v10  ;;  %v4400_v36 = vand.u32 4294901760, %v4375_v27  ;;  %v4455_v56 = vld [vmem:[%s6157_s1 + $0xb0] sm:$0xff]  ;;  %v4485_v2 = vld [vmem:[%s6157_s1 + $0xa8] sm:$0xff] }
   0x8   :  { %6241 = vst [vmem:[#allocation2_spill] sm:$0xff] %v4385_v30  ;;  %6242 = vst [vmem:[#allocation3_spill] sm:$0xff] %v4391_v32  ;;  %3391 = vmatprep.subr.mxu0 %v4316_v10  ;;  %v316_v38 = vsub.f32 %v4337_v18, %v6178_v29  ;;  %v6174_v39 = vand.u32 4294901760, %v4388_v31  ;;  %v4413_v40 = vsub.f32 %v44_v8, %v4318_v11  ;;  %v4416_v41 = vand.u32 4294901760, %v4380_v28  ;;  %v4470_v61 = vld [vmem:[%s6157_s1 + $0x30] sm:$0xff] }
   0x9   :  { %6243 = vst [vmem:[#allocation4_spill] sm:$0xff] %v4400_v36  ;;  %3392 = vmatpush3.msra.mxu0 %v4318_v11  ;;  %v204_v42 = vsub.f32 %v4359_v23, %v6177_v33  ;;  %v323_v43 = vsub.f32 %v4365_v25, %v6175_v34  ;;  %v6172_v44 = vand.u32 4294901760, %v4397_v35  ;;  %v4427_v45 = vsub.f32 %v59_v12, %v4330_v15  ;;  %v4621_v33 = vld [vmem:[%s6157_s1 + $0x88] sm:$0xff] }
   0xa   :  { %6244 = vst [vmem:[#allocation5_spill] sm:$0xff] %v4416_v41  ;;  %3393 = vmatprep.subr.mxu0 %v4330_v15  ;;  %v317_v47 = vand.u32 4294901760, %v316_v38  ;;  %v211_v48 = vsub.f32 %v4388_v31, %v6174_v39  ;;  %v6170_v49 = vand.u32 4294901760, %v4413_v40  ;;  %v4440_v50 = vand.u32 4294901760, %v4405_v37 }
   0xb   :  { %3394 = vmatpush3.msra.mxu0 %v4332_v16  ;;  %v205_v52 = vand.u32 4294901760, %v204_v42  ;;  %v324_v53 = vand.u32 4294901760, %v323_v43  ;;  %v330_v54 = vsub.f32 %v4397_v35, %v6172_v44  ;;  %v6169_v55 = vand.u32 4294901760, %v4427_v45  ;;  %v4594_v44 = vld [vmem:[%s6157_s1 + $0x90] sm:$0xff] }
   0xc   :  { %6245 = vst [vmem:[#allocation6_spill] sm:$0xff] %v4440_v50  ;;  %3395 = vmatprep.subr.mxu0 %v4334_v17  ;;  %3422 = vmatprep.subr.mxu1 %v317_v47  ;;  %v212_v57 = vand.u32 4294901760, %v211_v48  ;;  %v218_v58 = vsub.f32 %v4413_v40, %v6170_v49  ;;  %v4462_v59 = vsub.f32 %v43_v13, %v4332_v16  ;;  %v4465_v60 = vand.u32 4294901760, %v4432_v46  ;;  %v4499_v13 = vld [vmem:[%s6157_s1 + $0x28] sm:$0xff]  ;;  %v4578_v49 = vld [vmem:[%s6157_s1 + $0x18] sm:$0xff] }
   0xd   :  { %3396 = vmatpush3.msra.mxu0 %v4356_v22  ;;  %3423 = vmatpush3.msra.mxu1 %v205_v52  ;;  %v331_v62 = vand.u32 4294901760, %v330_v54  ;;  %v337_v63 = vsub.f32 %v4427_v45, %v6169_v55  ;;  %v4477_v0 = vsub.f32 %v58_v14, %v4334_v17  ;;  %v4480_v1 = vand.u32 4294901760, %v4445_v51 }
   0xe   :  { %6246 = vst [vmem:[#allocation7_spill] sm:$0xff] %v4465_v60  ;;  %3397 = vmatprep.subr.mxu0 %v4362_v24  ;;  %3424 = vmatprep.subr.mxu1 %v324_v53  ;;  %v219_v6 = vand.u32 4294901760, %v218_v58  ;;  %v6167_v7 = vand.u32 4294901760, %v4462_v59  ;;  %v4491_v8 = vsub.f32 %v4342_v19, %v4356_v22  ;;  %v4494_v12 = vand.u32 4294901760, %v4455_v56 }
   0xf   :  { %6247 = vst [vmem:[#allocation8_spill] sm:$0xff] %v4480_v1  ;;  %3398 = vmatpush3.msra.mxu0 %v4385_v30  ;;  %3425 = vmatpush3.msra.mxu1 %v212_v57  ;;  %v338_v14 = vand.u32 4294901760, %v337_v63  ;;  %v6165_v38 = vand.u32 4294901760, %v4477_v0  ;;  %v4505_v42 = vsub.f32 %v4347_v20, %v4362_v24  ;;  %v4508_v19 = vand.u32 4294901760, %v4470_v61  ;;  %v4525_v20 = vld [vmem:[%s6157_s1 + $0xa0] sm:$0xff] }
  0x10   :  { %6248 = vst [vmem:[#allocation9_spill] sm:$0xff] %v4494_v12  ;;  %3399 = vmatprep.subr.mxu0 %v4391_v32  ;;  %3426 = vmatprep.subr.mxu1 %v331_v62  ;;  %v225_v43 = vsub.f32 %v4462_v59, %v6167_v7  ;;  %v6166_v47 = vand.u32 4294901760, %v4491_v8  ;;  %v4517_v48 = vsub.f32 %v4352_v21, %v4385_v30  ;;  %v4520_v52 = vand.u32 4294901760, %v4485_v2 }
  0x11   :  { %6249 = vst [vmem:[#allocation10_spill] sm:$0xff] %v4508_v19  ;;  %3400 = vmatpush3.msra.mxu0 %v4400_v36  ;;  %3427 = vmatpush3.msra.mxu1 %v219_v6  ;;  %v344_v53 = vsub.f32 %v4477_v0, %v6165_v38  ;;  %v6168_v54 = vand.u32 4294901760, %v4505_v42  ;;  %v4534_v21 = vsub.f32 %v4370_v26, %v4391_v32  ;;  %v4537_v57 = vand.u32 4294901760, %v4499_v13  ;;  %v4551_v26 = vld [vmem:[%s6157_s1 + $0x20] sm:$0xff] }
  0x12   :  { %6250 = vst [vmem:[#allocation11_spill] sm:$0xff] %v4520_v52  ;;  %3401 = vmatprep.subr.mxu0 %v4416_v41  ;;  %3428 = vmatprep.subr.mxu1 %v338_v14  ;;  %v226_v58 = vand.u32 4294901760, %v225_v43  ;;  %v232_v62 = vsub.f32 %v4491_v8, %v6166_v47  ;;  %v6171_v63 = vand.u32 4294901760, %v4517_v48  ;;  %v4546_v6 = vsub.f32 %v4375_v27, %v4400_v36  ;;  %v4564_v27 = vld [vmem:[%s6157_s1 + $0x98] sm:$0xff] }
  0x13   :  { %6251 = vst [vmem:[#allocation12_spill] sm:$0xff] %v4537_v57  ;;  %3402 = vmatpush3.msra.mxu0 %v4440_v50  ;;  %v345_v38 = vand.u32 4294901760, %v344_v53  ;;  %v351_v14 = vsub.f32 %v4505_v42, %v6168_v54  ;;  %v6173_v43 = vand.u32 4294901760, %v4534_v21  ;;  %v4559_v47 = vand.u32 4294901760, %v4525_v20 }
  0x14   :  { %3429 = vmatpush3.msra.mxu1 %v226_v58  ;;  %3403 = vmatprep.subr.mxu0 %v4465_v60  ;;  %v233_v7 = vand.u32 4294901760, %v232_v62  ;;  %v239_v53 = vsub.f32 %v4517_v48, %v6171_v63  ;;  %v6176_v54 = vand.u32 4294901760, %v4546_v6  ;;  %v4573_v55 = vsub.f32 %v4380_v28, %v4416_v41 }
  0x15   :  { %6252 = vst [vmem:[#allocation13_spill] sm:$0xff] %v4559_v47  ;;  %3430 = vmatprep.subr.mxu1 %v345_v38  ;;  %3404 = vmatpush3.msra.mxu0 %v4480_v1  ;;  %v352_v58 = vand.u32 4294901760, %v351_v14  ;;  %v358_v62 = vsub.f32 %v4534_v21, %v6173_v43  ;;  %v4585_v63 = vand.u32 4294901760, %v4551_v26  ;;  %v4589_v28 = vsub.f32 %v4405_v37, %v4440_v50  ;;  %v4607_v37 = vld [vmem:[%s6157_s1 + $0x10] sm:$0xff] }
  0x16   :  { %3431 = vmatpush3.msra.mxu1 %v233_v7  ;;  %3405 = vmatprep.subr.mxu0 %v4494_v12  ;;  %v240_v38 = vand.u32 4294901760, %v239_v53  ;;  %v246_v14 = vsub.f32 %v4546_v6, %v6176_v54  ;;  %v6181_v43 = vand.u32 4294901760, %v4573_v55  ;;  %v4602_v39 = vand.u32 4294901760, %v4564_v27 }
  0x17   :  { %6253 = vst [vmem:[#allocation14_spill] sm:$0xff] %v4585_v63  ;;  %3432 = vmatprep.subr.mxu1 %v352_v58  ;;  %3406 = vmatpush3.msra.mxu0 %v4508_v19  ;;  %v359_v7 = vand.u32 4294901760, %v358_v62  ;;  %v6182_v53 = vand.u32 4294901760, %v4589_v28  ;;  %v4613_v34 = vsub.f32 %v4432_v46, %v4465_v60  ;;  %v4616_v54 = vand.u32 4294901760, %v4578_v49 }
  0x18   :  { %6254 = vst [vmem:[#allocation15_spill] sm:$0xff] %v4602_v39  ;;  %3433 = vmatpush3.msra.mxu1 %v240_v38  ;;  %3407 = vmatprep.subr.mxu0 %v4520_v52  ;;  %v247_v58 = vand.u32 4294901760, %v246_v14  ;;  %v365_v62 = vsub.f32 %v4573_v55, %v6181_v43  ;;  %v4629_v46 = vsub.f32 %v4445_v51, %v4480_v1  ;;  %v4632_v29 = vand.u32 4294901760, %v4594_v44  ;;  %v4649_v51 = vld [vmem:[%s6157_s1 + $0x8] sm:$0xff] }
  0x19   :  { %3434 = vmatprep.subr.mxu1 %v359_v7  ;;  %3408 = vmatpush3.msra.mxu0 %v4537_v57  ;;  %v253_v38 = vsub.f32 %v4589_v28, %v6182_v53  ;;  %v4641_v60 = vsub.f32 %v4455_v56, %v4494_v12  ;;  %v4644_v43 = vand.u32 4294901760, %v4607_v37  ;;  %v4655_v14 = vsub.f32 %v4470_v61, %v4508_v19  ;;  %v4663_v12 = vld [vmem:[%s6157_s1 + $0x80] sm:$0xff] }
  0x1a   :  { %6255 = vst [vmem:[#allocation16_spill] sm:$0xff] %v4632_v29  ;;  %3435 = vmatpush3.msra.mxu1 %v247_v58  ;;  %3409 = vmatprep.subr.mxu0 %v4559_v47  ;;  %v366_v7 = vand.u32 4294901760, %v365_v62  ;;  %v4658_v56 = vand.u32 4294901760, %v4621_v33  ;;  %v6259_v1 = vand.u32 4294901760, %v4613_v34  ;;  %v4672_v61 = vsub.f32 %v4485_v2, %v4520_v52  ;;  %v4689_v2 = vld [vmem:[%s6157_s1] sm:$0xff] }
  0x1b   :  { %6256 = vst [vmem:[#allocation17_spill] sm:$0xff] %v4644_v43  ;;  %6257 = vst [vmem:[#allocation18_spill] sm:$0xff] %v4655_v14  ;;  %3410 = vmatpush3.msra.mxu0 %v4585_v63  ;;  %v254_v58 = vand.u32 4294901760, %v253_v38  ;;  %v6199_v53 = vand.u32 4294901760, %v4641_v60  ;;  %v6261_v19 = vand.u32 4294901760, %v4629_v46  ;;  %v4680_v38 = vand.u32 4294901760, %v4649_v51 }
  0x1c   :  { %6258 = vst [vmem:[#allocation19_spill] sm:$0xff] %v4658_v56  ;;  %v372_v62 = vsub.f32 %v4613_v34, %v6259_v1  ;;  %6260 = vst [vmem:[#allocation20_spill] sm:$0xff] %v4672_v61  ;;  %3436 = vmatprep.subr.mxu1 %v366_v7  ;;  %3411 = vmatprep.subr.mxu0 %v4602_v39  ;;  %v4684_v1 = vsub.f32 %v4499_v13, %v4537_v57  ;;  %v4697_v52 = vand.u32 4294901760, %v4663_v12  ;;  %v29_v13 = vld [vmem:[%s6158_s0] sm:$0xff] }
  0x1d   :  { %v260_v50 = vsub.f32 %v4629_v46, %v6261_v19  ;;  %6262 = vst [vmem:[#allocation21_spill] sm:$0xff] %v4680_v38  ;;  %3437 = vmatpush3.msra.mxu1 %v254_v58  ;;  %3412 = vmatpush3.msra.mxu0 %v4616_v54  ;;  %v379_v19 = vsub.f32 %v4641_v60, %v6199_v53  ;;  %v6263_v58 = vand.u32 4294901760, %v4655_v14  ;;  %v6264_v32 = vand.u32 4294901760, %v4672_v61 }
  0x1e   :  { %v373_v7 = vand.u32 4294901760, %v372_v62  ;;  %3413 = vmatprep.subr.mxu0 %v4632_v29  ;;  %v4709_v53 = vsub.f32 %v4525_v20, %v4559_v47  ;;  %v4716_v30 = vand.u32 4294901760, %v4689_v2  ;;  %v6265_v20 = vand.u32 4294901760, %v4684_v1 }
  0x1f   :  { %v261_v57 = vand.u32 4294901760, %v260_v50  ;;  %v267_v62 = vsub.f32 %v4655_v14, %v6263_v58  ;;  %v380_v41 = vand.u32 4294901760, %v379_v19  ;;  %3414 = vmatpush3.msra.mxu0 %v4644_v43  ;;  %v386_v50 = vsub.f32 %v4672_v61, %v6264_v32 }
  0x20   :  { %3438 = vmatprep.subr.mxu1 %v373_v7  ;;  %v4720_v58 = vsub.f32 %v4551_v26, %v4585_v63  ;;  %3415 = vmatprep.subr.mxu0 %v4658_v56  ;;  %v274_v7 = vsub.f32 %v4684_v1, %v6265_v20  ;;  %v6210_v19 = vand.u32 4294901760, %v4709_v53  ;;  %v86_v47 = vcombine.high %v29_v13, %v29_v13 }
  0x21   :  { %3439 = vmatpush3.msra.mxu1 %v261_v57  ;;  %v268_v36 = vand.u32 4294901760, %v267_v62  ;;  %v387_v32 = vand.u32 4294901760, %v386_v50  ;;  %3416 = vmatpush3.msra.mxu0 %v4680_v38  ;;  %v4729_v14 = vand.u32 4294901760, %v29_v13 }
  0x22   :  { %3440 = vmatprep.subr.mxu1 %v380_v41  ;;  %v6213_v61 = vand.u32 4294901760, %v4720_v58  ;;  %v275_v57 = vand.u32 4294901760, %v274_v7  ;;  %3417 = vmatprep.subr.mxu0 %v4697_v52  ;;  %v393_v26 = vsub.f32 %v4709_v53, %v6210_v19  ;;  %v4735_v62 = vand.u32 4294901760, %v86_v47 }
  0x23   :  { %6266 = vst [vmem:[#allocation22_spill] sm:$0xff] %v4729_v14  ;;  %3441 = vmatpush3.msra.mxu1 %v268_v36  ;;  %v4739_v41 = vsub.f32 %v4564_v27, %v4602_v39  ;;  %3418 = vmatpush3.msra.mxu0 %v4716_v30  ;;  %v4746_v50 = vsub.f32 %v29_v13, %v4729_v14 }
  0x24   :  { %6267 = vst [vmem:[#allocation23_spill] sm:$0xff] %v4735_v62  ;;  %3442 = vmatprep.subr.mxu1 %v387_v32  ;;  %v281_v36 = vsub.f32 %v4720_v58, %v6213_v61  ;;  %v394_v20 = vand.u32 4294901760, %v393_v26  ;;  %v4749_v7 = vsub.f32 %v86_v47, %v4735_v62  ;;  %3457 = vmatprep.subr.mxu0 %v4337_v18 }
  0x25   :  { %3443 = vmatpush3.msra.mxu1 %v275_v57  ;;  %v6214_v19 = vand.u32 4294901760, %v4739_v41  ;;  %v4755_v27 = vsub.f32 %v4578_v49, %v4616_v54  ;;  %v6217_v39 = vand.u32 4294901760, %v4746_v50  ;;  %v4760_v13 = vsub.f32 %v4594_v44, %v4632_v29  ;;  %425 = vmatprep.mubr.f32.mxu1 %v4735_v62 }
  0x26   :  { %v282_v32 = vand.u32 4294901760, %v281_v36  ;;  %v4764_v57 = vsub.f32 %v4607_v37, %v4644_v43  ;;  %3444 = vmatprep.subr.mxu1 %v394_v20  ;;  %v6224_v47 = vand.u32 4294901760, %v4749_v7  ;;  %v4774_v36 = vsub.f32 %v4621_v33, %v4658_v56 }
  0x27   :  { %v400_v49 = vsub.f32 %v4739_v41, %v6214_v19  ;;  %v193_v44 = vsub.f32 %v4746_v50, %v6217_v39  ;;  %v6227_v37 = vand.u32 4294901760, %v4760_v13  ;;  %v4783_v61 = vsub.f32 %v4649_v51, %v4680_v38 }
  0x28   :  { %3445 = vmatpush3.msra.mxu1 %v282_v32  ;;  %v187_v19 = vsub.f32 %v4749_v7, %v6224_v47  ;;  %v6268_v33 = vand.u32 4294901760, %v4755_v27  ;;  %v6231_v62 = vand.u32 4294901760, %v4774_v36  ;;  %v6269_v56 = vand.u32 4294901760, %v4764_v57 }
  0x29   :  { %v401_v26 = vand.u32 4294901760, %v400_v49  ;;  %v194_v39 = vand.u32 4294901760, %v193_v44  ;;  %v407_v20 = vsub.f32 %v4760_v13, %v6227_v37  ;;  %v6230_v38 = vand.u32 4294901760, %v4783_v61 }
  0x2a   :  { %v288_v32 = vsub.f32 %v4755_v27, %v6268_v33  ;;  %v295_v51 = vsub.f32 %v4764_v57, %v6269_v56  ;;  %v188_v43 = vand.u32 4294901760, %v187_v19  ;;  %v414_v33 = vsub.f32 %v4774_v36, %v6231_v62 }
  0x2b   :  { %3446 = vmatprep.subr.mxu1 %v401_v26  ;;  %v4804_v44 = vsub.f32 %v4663_v12, %v4697_v52  ;;  %v408_v47 = vand.u32 4294901760, %v407_v20  ;;  %v302_v37 = vsub.f32 %v4783_v61, %v6230_v38  ;;  %v4811_v56 = vsub.f32 %v4689_v2, %v4716_v30  ;;  %v6286_v38 = vld [vmem:[#allocation15_spill] sm:$0xff] }
  0x2c   :  { %v289_v49 = vand.u32 4294901760, %v288_v32  ;;  %v296_v29 = vand.u32 4294901760, %v295_v51  ;;  %189 = vmatprep.mubr.f32.mxu0 %v188_v43  ;;  %v415_v19 = vand.u32 4294901760, %v414_v33  ;;  %v6275_v51 = vld [vmem:[#allocation3_spill] sm:$0xff]  ;;  %v6277_v33 = vld [vmem:[#allocation5_spill] sm:$0xff]  ;;  %v6287_v62 = vand.u32 4294901760, %v4337_v18 }
  0x2d   :  { %6270 = vst [vmem:[#allocation24_spill] sm:$0xff] %v4804_v44  ;;  %6271 = vst [vmem:[#allocation25_spill] sm:$0xff] %v4811_v56  ;;  %v6229_v26 = vand.u32 4294901760, %v4804_v44  ;;  %195 = vmatmul.mubr.f32.vlgmr.msra.gmra.mxu0 %v194_v39  ;;  %v303_v32 = vand.u32 4294901760, %v302_v37  ;;  %v6228_v12 = vand.u32 4294901760, %v4811_v56  ;;  %v6274_v37 = vld [vmem:[#allocation20_spill] sm:$0xff] }
  0x2e   :  { %3447 = vmatpush3.msra.mxu1 %v289_v49  ;;  %3458 = vmatpush3.msra.mxu0 %v4359_v23  ;;  %v6276_v49 = vld [vmem:[#allocation4_spill] sm:$0xff]  ;;  %v6294_v18 = vand.u32 4294901760, %v4397_v35 }
  0x2f   :  { %3448 = vmatprep.subr.mxu1 %v408_v47  ;;  %v421_v20 = vsub.f32 %v4804_v44, %v6229_v26  ;;  %3459 = vmatprep.subr.mxu0 %v4365_v25  ;;  %v309_v43 = vsub.f32 %v4811_v56, %v6228_v12  ;;  %v6273_v47 = vld [vmem:[#allocation2_spill] sm:$0xff]  ;;  %v6284_v12 = vld [vmem:[#allocation12_spill] sm:$0xff]  ;;  %v6285_v26 = vld [vmem:[#allocation13_spill] sm:$0xff] }
  0x30   :  { %3449 = vmatpush3.msra.mxu1 %v296_v29  ;;  %3460 = vmatpush3.msra.mxu0 %v4388_v31  ;;  %v6272_v29 = vld [vmem:[#allocation18_spill] sm:$0xff] }
  0x31   :  { %3450 = vmatprep.subr.mxu1 %v415_v19  ;;  %v422_v39 = vand.u32 4294901760, %v421_v20  ;;  %3461 = vmatprep.subr.mxu0 %v4397_v35  ;;  %v310_v2 = vand.u32 4294901760, %v309_v43  ;;  %v6278_v19 = vld [vmem:[#allocation6_spill] sm:$0xff]  ;;  %v6280_v20 = vld [vmem:[#allocation8_spill] sm:$0xff]  ;;  %v6281_v43 = vld [vmem:[#allocation9_spill] sm:$0xff]  ;;  %v6300_v35 = vand.u32 4294901760, %v4746_v50 }
  0x32   :  { %3451 = vmatpush3.msra.mxu1 %v303_v32  ;;  %562 = vmatprep.mubr.f32.mxu0 %v4749_v7  ;;  %v6279_v32 = vld [vmem:[#allocation7_spill] sm:$0xff] }
  0x33   :  { %3462 = vmatpush3.msra.mxu0 %v4413_v40  ;;  %3452 = vmatprep.subr.mxu1 %v422_v39  ;;  %v6282_v39 = vld [vmem:[#allocation10_spill] sm:$0xff] }
  0x34   :  { %3463 = vmatprep.subr.mxu0 %v4427_v45  ;;  %3453 = vmatpush3.msra.mxu1 %v310_v2  ;;  %v6283_v2 = vld [vmem:[#allocation11_spill] sm:$0xff] }
  0x35   :  { %3464 = vmatpush3.msra.mxu0 %v4462_v59  ;;  %427 = vmatmul.mubr.f32.vlgmr.msra.gmra.mxu1 %v4729_v14  ;;  %v6288_v14 = vand.u32 4294901760, %v4359_v23  ;;  %v6296_v23 = vand.u32 4294901760, %v4413_v40  ;;  %v6302_v40 = vand.u32 4294901760, %v4491_v8 }
  0x36   :  { %3465 = vmatprep.subr.mxu0 %v4477_v0  ;;  %3492 = vmatprep.subr.mxu1 %v4299_v3 }
  0x37   :  { %3466 = vmatpush3.msra.mxu0 %v4491_v8  ;;  %3493 = vmatpush3.msra.mxu1 %v4301_v4 }
  0x38   :  { %3467 = vmatprep.subr.mxu0 %v4505_v42  ;;  %3494 = vmatprep.subr.mxu1 %v4303_v5 }
  0x39   :  { %3468 = vmatpush3.msra.mxu0 %v4517_v48  ;;  %3495 = vmatpush3.msra.mxu1 %v4314_v9 }
  0x3a   :  { %3469 = vmatprep.subr.mxu0 %v4534_v21  ;;  %3496 = vmatprep.subr.mxu1 %v4316_v10 }
  0x3b   :  { %3470 = vmatpush3.msra.mxu0 %v4546_v6  ;;  %3497 = vmatpush3.msra.mxu1 %v4318_v11 }
  0x3c   :  { %3471 = vmatprep.subr.mxu0 %v4573_v55  ;;  %3498 = vmatprep.subr.mxu1 %v4330_v15 }
  0x3d   :  { %3472 = vmatpush3.msra.mxu0 %v4589_v28  ;;  %3499 = vmatpush3.msra.mxu1 %v4332_v16 }
  0x3e   :  { %3473 = vmatprep.subr.mxu0 %v4613_v34  ;;  %3500 = vmatprep.subr.mxu1 %v4334_v17 }
  0x3f   :  { %3474 = vmatpush3.msra.mxu0 %v4629_v46  ;;  %3501 = vmatpush3.msra.mxu1 %v4356_v22 }
  0x40   :  { %3475 = vmatprep.subr.mxu0 %v4641_v60  ;;  %3502 = vmatprep.subr.mxu1 %v4362_v24 }
  0x41   :  { %3476 = vmatpush3.msra.mxu0 %v6272_v29  ;;  %3503 = vmatpush3.msra.mxu1 %v6273_v47 }
  0x42   :  { %3477 = vmatprep.subr.mxu0 %v6274_v37  ;;  %3504 = vmatprep.subr.mxu1 %v6275_v51 }
  0x43   :  { %3478 = vmatpush3.msra.mxu0 %v4684_v1  ;;  %3505 = vmatpush3.msra.mxu1 %v6276_v49 }
  0x44   :  { %3479 = vmatprep.subr.mxu0 %v4709_v53  ;;  %3506 = vmatprep.subr.mxu1 %v6277_v33 }
  0x45   :  { %3480 = vmatpush3.msra.mxu0 %v4720_v58  ;;  %3507 = vmatpush3.msra.mxu1 %v6278_v19 }
  0x46   :  { %3481 = vmatprep.subr.mxu0 %v4739_v41  ;;  %3508 = vmatprep.subr.mxu1 %v6279_v32 }
  0x47   :  { %3482 = vmatpush3.msra.mxu0 %v4755_v27  ;;  %3509 = vmatpush3.msra.mxu1 %v6280_v20 }
  0x48   :  { %3483 = vmatprep.subr.mxu0 %v4760_v13  ;;  %3510 = vmatprep.subr.mxu1 %v6281_v43 }
  0x49   :  { %3484 = vmatpush3.msra.mxu0 %v4764_v57  ;;  %3511 = vmatpush3.msra.mxu1 %v6282_v39 }
  0x4a   :  { %3485 = vmatprep.subr.mxu0 %v4774_v36  ;;  %3512 = vmatprep.subr.mxu1 %v6283_v2 }
  0x4b   :  { %3486 = vmatpush3.msra.mxu0 %v4783_v61  ;;  %3513 = vmatpush3.msra.mxu1 %v6284_v12  ;;  %v6289_v12 = vld [vmem:[#allocation16_spill] sm:$0xff] }
  0x4c   :  { %3487 = vmatprep.subr.mxu0 %v4804_v44  ;;  %3514 = vmatprep.subr.mxu1 %v6285_v26  ;;  %v6290_v26 = vand.u32 4294901760, %v4365_v25  ;;  %v6293_v44 = vld [vmem:[#allocation19_spill] sm:$0xff]  ;;  %v6297_v25 = vand.u32 4294901760, %v4427_v45  ;;  %v6303_v45 = vand.u32 4294901760, %v4505_v42  ;;  %v6318_v42 = vand.u32 4294901760, %v4755_v27  ;;  %v6324_v27 = vld [vmem:[#allocation24_spill] sm:$0xff] }
  0x4d   :  { %3488 = vmatpush3.msra.mxu0 %v4811_v56  ;;  %3515 = vmatpush3.msra.mxu1 %v4585_v63  ;;  %v6291_v56 = vld [vmem:[#allocation17_spill] sm:$0xff]  ;;  %v6292_v63 = vand.u32 4294901760, %v4388_v31  ;;  %v6298_v31 = vand.u32 4294901760, %v4749_v7  ;;  %v6323_v7 = vld [vmem:[#allocation12_spill] sm:$0xff] }
  0x4e   :  { %565 = vmatmul.mubr.f32.vlgmr.msra.gmra.mxu0 %v4746_v50  ;;  %3516 = vmatprep.subr.mxu1 %v6286_v38  ;;  %v74_v50 = vld [vmem:[%s6157_s1 + $0x158] sm:$0xff] }
  0x4f   :  { %3527 = vmatprep.subr.mxu0 %v6287_v62  ;;  %3517 = vmatpush3.msra.mxu1 %v4616_v54  ;;  %v6295_v62 = vld [vmem:[#allocation21_spill] sm:$0xff] }
  0x50   :  { %3528 = vmatpush3.msra.mxu0 %v6288_v14  ;;  %3518 = vmatprep.subr.mxu1 %v6289_v12  ;;  %v6301_v14 = vand.u32 4294901760, %v4477_v0  ;;  %v6305_v0 = vand.u32 4294901760, %v4534_v21  ;;  %v6319_v21 = vand.u32 4294901760, %v4760_v13  ;;  %v6325_v13 = vand.u32 4294901760, %v6324_v27 }
  0x51   :  { %3529 = vmatprep.subr.mxu0 %v6290_v26  ;;  %3519 = vmatpush3.msra.mxu1 %v6291_v56  ;;  %v6326_v26 = vld [vmem:[#allocation13_spill] sm:$0xff] }
  0x52   :  { %3530 = vmatpush3.msra.mxu0 %v6292_v63  ;;  %3520 = vmatprep.subr.mxu1 %v6293_v44  ;;  %v6299_v63 = vand.u32 4294901760, %v4462_v59  ;;  %v6304_v59 = vand.u32 4294901760, %v4517_v48  ;;  %v76_v48 = vld [vmem:[%s6157_s1 + $0x168] sm:$0xff] }
  0x53   :  { %3531 = vmatprep.subr.mxu0 %v6294_v18  ;;  %3521 = vmatpush3.msra.mxu1 %v6295_v62 }
  0x54   :  { %3532 = vmatpush3.msra.mxu0 %v6296_v23  ;;  %3522 = vmatprep.subr.mxu1 %v4697_v52  ;;  %v71_v23 = vld [vmem:[%s6157_s1 + $0x140] sm:$0xff] }
  0x55   :  { %3533 = vmatprep.subr.mxu0 %v6297_v25  ;;  %3523 = vmatpush3.msra.mxu1 %v4716_v30 }
  0x56   :  { %669 = vmatprep.mubr.f32.mxu1 %v6298_v31  ;;  %3534 = vmatpush3.msra.mxu0 %v6299_v63  ;;  %v70_v63 = vld [vmem:[%s6157_s1 + $0x138] sm:$0xff] }
  0x57   :  { %673 = vmatmul.mubr.f32.vlgmr.msra.gmra.mxu1 %v6300_v35  ;;  %3535 = vmatprep.subr.mxu0 %v6301_v14 }
  0x58   :  { %3562 = vmatprep.subr.mxu1 %v4299_v3  ;;  %3536 = vmatpush3.msra.mxu0 %v6302_v40  ;;  %v6306_v3 = vand.u32 4294901760, %v4546_v6 }
  0x59   :  { %3563 = vmatpush3.msra.mxu1 %v4301_v4  ;;  %3537 = vmatprep.subr.mxu0 %v6303_v45  ;;  %v6307_v4 = vand.u32 4294901760, %v4573_v55  ;;  %v77_v55 = vld [vmem:[%s6157_s1 + $0x170] sm:$0xff] }
  0x5a   :  { %3564 = vmatprep.subr.mxu1 %v4303_v5  ;;  %3538 = vmatpush3.msra.mxu0 %v6304_v59  ;;  %v6308_v5 = vand.u32 4294901760, %v4589_v28  ;;  %v4974_v6 = vand.u32 4294901760, %v77_v55  ;;  %v6320_v28 = vand.u32 4294901760, %v4764_v57  ;;  %v5076_v59 = vand.u32 4294901760, %v70_v63 }
  0x5b   :  { %3565 = vmatpush3.msra.mxu1 %v4314_v9  ;;  %3539 = vmatprep.subr.mxu0 %v6305_v0  ;;  %v6309_v9 = vand.u32 4294901760, %v4613_v34  ;;  %v6316_v34 = vand.u32 4294901760, %v4720_v58  ;;  %v4988_v58 = vand.u32 4294901760, %v76_v48 }
  0x5c   :  { %3566 = vmatprep.subr.mxu1 %v4316_v10  ;;  %3540 = vmatpush3.msra.mxu0 %v6306_v3  ;;  %v6310_v10 = vand.u32 4294901760, %v4629_v46  ;;  %v6321_v46 = vand.u32 4294901760, %v4774_v36  ;;  %v5000_v57 = vsub.f32 %v77_v55, %v4974_v6  ;;  %v66_v55 = vld [vmem:[%s6157_s1 + $0x118] sm:$0xff] }
  0x5d   :  { %3567 = vmatpush3.msra.mxu1 %v4318_v11  ;;  %3541 = vmatprep.subr.mxu0 %v6307_v4  ;;  %v6311_v11 = vand.u32 4294901760, %v4641_v60  ;;  %v6317_v60 = vand.u32 4294901760, %v4739_v41  ;;  %v6322_v41 = vand.u32 4294901760, %v4783_v61  ;;  %v73_v61 = vld [vmem:[%s6157_s1 + $0x150] sm:$0xff] }
  0x5e   :  { %3568 = vmatprep.subr.mxu1 %v4330_v15  ;;  %3542 = vmatpush3.msra.mxu0 %v6308_v5  ;;  %v6312_v15 = vand.u32 4294901760, %v6272_v29  ;;  %v6327_v29 = vld [vmem:[#allocation25_spill] sm:$0xff]  ;;  %v1051_v18 = vand.u32 4294901760, %v5000_v57 }
  0x5f   :  { %3569 = vmatpush3.msra.mxu1 %v4332_v16  ;;  %3543 = vmatprep.subr.mxu0 %v6309_v9  ;;  %v6313_v16 = vand.u32 4294901760, %v6274_v37  ;;  %v6329_v37 = vld [vmem:[#allocation23_spill] sm:$0xff] }
  0x60   :  { %3570 = vmatprep.subr.mxu1 %v4334_v17  ;;  %3544 = vmatpush3.msra.mxu0 %v6310_v10  ;;  %v6314_v17 = vand.u32 4294901760, %v4684_v1  ;;  %v1052_v35 = vsub.f32 %v5000_v57, %v1051_v18 }
  0x61   :  { %3571 = vmatpush3.msra.mxu1 %v4356_v22  ;;  %3545 = vmatprep.subr.mxu0 %v6311_v11  ;;  %v78_v22 = vld [vmem:[%s6157_s1 + $0x178] sm:$0xff]  ;;  %v67_v11 = vld [vmem:[%s6157_s1 + $0x120] sm:$0xff] }
  0x62   :  { %3572 = vmatprep.subr.mxu1 %v4362_v24  ;;  %3546 = vmatpush3.msra.mxu0 %v6312_v15  ;;  %v6315_v24 = vand.u32 4294901760, %v4709_v53  ;;  %v4963_v8 = vand.u32 4294901760, %v78_v22  ;;  %v75_v53 = vld [vmem:[%s6157_s1 + $0x160] sm:$0xff]  ;;  %v1053_v3 = vand.u32 4294901760, %v1052_v35  ;;  %v30_v15 = vld [vmem:[%s6158_s0 + $0x8] sm:$0xf] }
  0x63   :  { %3573 = vmatpush3.msra.mxu1 %v6273_v47  ;;  %3547 = vmatprep.subr.mxu0 %v6313_v16  ;;  %v5002_v36 = vand.u32 4294901760, %v75_v53  ;;  %v6328_v47 = vand.u32 4294901760, %v6327_v29 }
  0x64   :  { %3574 = vmatprep.subr.mxu1 %v6275_v51  ;;  %3548 = vmatpush3.msra.mxu0 %v6314_v17  ;;  %v4986_v1 = vsub.f32 %v78_v22, %v4963_v8  ;;  %v6330_v51 = vld [vmem:[#allocation14_spill] sm:$0xff]  ;;  %v5106_v17 = vsub.f32 %v70_v63, %v5076_v59 }
  0x65   :  { %3575 = vmatpush3.msra.mxu1 %v6276_v49  ;;  %3549 = vmatprep.subr.mxu0 %v6315_v24  ;;  %v5013_v49 = vsub.f32 %v76_v48, %v4988_v58 }
  0x66   :  { %3576 = vmatprep.subr.mxu1 %v6277_v33  ;;  %3550 = vmatpush3.msra.mxu0 %v6316_v34  ;;  %v5015_v33 = vand.u32 4294901760, %v74_v50  ;;  %v1100_v27 = vand.u32 4294901760, %v5106_v17 }
  0x67   :  { %3577 = vmatpush3.msra.mxu1 %v6278_v19  ;;  %3551 = vmatprep.subr.mxu0 %v6317_v60  ;;  %v1044_v19 = vand.u32 4294901760, %v4986_v1  ;;  %v1058_v31 = vand.u32 4294901760, %v5013_v49 }
  0x68   :  { %3578 = vmatprep.subr.mxu1 %v6279_v32  ;;  %3552 = vmatpush3.msra.mxu0 %v6318_v42  ;;  %v72_v32 = vld [vmem:[%s6157_s1 + $0x148] sm:$0xff] }
  0x69   :  { %3579 = vmatpush3.msra.mxu1 %v6280_v20  ;;  %3553 = vmatprep.subr.mxu0 %v6319_v21  ;;  %v6331_v20 = vld [vmem:[#allocation22_spill] sm:$0xff]  ;;  %v1045_v25 = vsub.f32 %v4986_v1, %v1044_v19  ;;  %v1059_v45 = vsub.f32 %v5013_v49, %v1058_v31  ;;  %v5126_v21 = vand.u32 4294901760, %v67_v11 }
  0x6a   :  { %3580 = vmatprep.subr.mxu1 %v6281_v43  ;;  %3554 = vmatpush3.msra.mxu0 %v6320_v28  ;;  %v4248_v43 = vmov 0.0   ;;  %v5128_v28 = vand.u32 4294901760, %v30_v15 }
  0x6b   :  { %3581 = vmatpush3.msra.mxu1 %v6282_v39  ;;  %3555 = vmatprep.subr.mxu0 %v6321_v46  ;;  %v5026_v39 = vsub.f32 %v75_v53, %v5002_v36  ;;  %v1046_v40 = vand.u32 4294901760, %v1045_v25  ;;  %v1060_v16 = vand.u32 4294901760, %v1059_v45  ;;  %v65_v46 = vld [vmem:[%s6157_s1 + $0x110] sm:$0xff]  ;;  %v1101_v25 = vsub.f32 %v5106_v17, %v1100_v27 }
  0x6c   :  { %3582 = vmatprep.subr.mxu1 %v6283_v2  ;;  %3556 = vmatpush3.msra.mxu0 %v6322_v41  ;;  %v5028_v2 = vand.u32 4294901760, %v73_v61 }
  0x6d   :  { %3583 = vmatpush3.msra.mxu1 %v6323_v7  ;;  %3557 = vmatprep.subr.mxu0 %v6325_v13  ;;  %v1065_v14 = vand.u32 4294901760, %v5026_v39  ;;  %v5142_v7 = vand.u32 4294901760, %v66_v55 }
  0x6e   :  { %3584 = vmatprep.subr.mxu1 %v6326_v26  ;;  %3558 = vmatpush3.msra.mxu0 %v6328_v47  ;;  %v64_v26 = vld [vmem:[%s6157_s1 + $0x108] sm:$0xff]  ;;  %v5155_v47 = vsub.f32 %v67_v11, %v5126_v21  ;;  %v1102_v11 = vand.u32 4294901760, %v1101_v25 }
  0x6f   :  { %839 = vmatprep.mubr.f32.mxu0 %v6329_v37  ;;  %3585 = vmatpush3.msra.mxu1 %v6330_v51  ;;  %v1066_v4 = vsub.f32 %v5026_v39, %v1065_v14  ;;  %v5161_v51 = vsub.f32 %v30_v15, %v5128_v28  ;;  %v5175_v63 = vand.u32 4294901760, %v64_v26 }
  0x70   :  { %841 = vmatmul.mubr.f32.vlgmr.msra.gmra.mxu0 %v6331_v20  ;;  %3586 = vmatprep.subr.mxu1 %v6286_v38  ;;  %v5036_v38 = vand.u32 4294901760, %v72_v32 }
  0x71   :  { %3807 = vmatprep.subr.mxu0 %v4248_v43  ;;  %3587 = vmatpush3.msra.mxu1 %v4616_v54  ;;  %v5041_v54 = vsub.f32 %v74_v50, %v5015_v33  ;;  %v1067_v60 = vand.u32 4294901760, %v1066_v4  ;;  %v1033_v4 = vand.u32 4294901760, %v5161_v51  ;;  %v5195_v15 = vsub.f32 %v64_v26, %v5175_v63 }
  0x72   :  { %3808 = vmatpush3.msra.mxu0 %v4963_v8  ;;  %3588 = vmatprep.subr.mxu1 %v6289_v12  ;;  %v5049_v12 = vand.u32 4294901760, %v71_v23 }
  0x73   :  { %3809 = vmatprep.subr.mxu0 %v4248_v43  ;;  %3589 = vmatpush3.msra.mxu1 %v6291_v56  ;;  %v5057_v56 = vsub.f32 %v73_v61, %v5028_v2  ;;  %v5157_v61 = vand.u32 4294901760, %v65_v46  ;;  %v1142_v26 = vand.u32 4294901760, %v5195_v15 }
  0x74   :  { %3810 = vmatpush3.msra.mxu0 %v4974_v6  ;;  %3590 = vmatprep.subr.mxu1 %v6293_v44  ;;  %v5066_v44 = vsub.f32 %v72_v32, %v5036_v38  ;;  %v5082_v0 = vsub.f32 %v71_v23, %v5049_v12  ;;  %v5170_v23 = vsub.f32 %v66_v55, %v5142_v7 }
  0x75   :  { %3811 = vmatprep.subr.mxu0 %v4248_v43  ;;  %3591 = vmatpush3.msra.mxu1 %v6295_v62  ;;  %v69_v62 = vld [vmem:[%s6157_s1 + $0x130] sm:$0xff]  ;;  %v1079_v9 = vand.u32 4294901760, %v5057_v56 }
  0x76   :  { %3812 = vmatpush3.msra.mxu0 %v4988_v58  ;;  %3592 = vmatprep.subr.mxu1 %v4697_v52  ;;  %v1072_v52 = vand.u32 4294901760, %v5041_v54  ;;  %v5092_v5 = vand.u32 4294901760, %v69_v62  ;;  %v1086_v10 = vand.u32 4294901760, %v5066_v44  ;;  %v1093_v34 = vand.u32 4294901760, %v5082_v0 }
  0x77   :  { %3813 = vmatprep.subr.mxu0 %v4248_v43  ;;  %3593 = vmatpush3.msra.mxu1 %v4716_v30  ;;  %v68_v30 = vld [vmem:[%s6157_s1 + $0x128] sm:$0xff]  ;;  %v1080_v48 = vsub.f32 %v5057_v56, %v1079_v9 }
  0x78   :  { %943 = vmatprep.mubr.f32.mxu1 %v6329_v37  ;;  %3814 = vmatpush3.msra.mxu0 %v5002_v36  ;;  %v1073_v22 = vsub.f32 %v5041_v54, %v1072_v52  ;;  %v5111_v24 = vand.u32 4294901760, %v68_v30  ;;  %v5121_v42 = vsub.f32 %v69_v62, %v5092_v5  ;;  %v1087_v53 = vsub.f32 %v5066_v44, %v1086_v10 }
  0x79   :  { %945 = vmatmul.mubr.f32.vlgmr.msra.gmra.mxu1 %v6331_v20  ;;  %3815 = vmatprep.subr.mxu0 %v4248_v43  ;;  %v1094_v13 = vsub.f32 %v5082_v0, %v1093_v34  ;;  %v1081_v29 = vand.u32 4294901760, %v1080_v48  ;;  %v63_v20 = vld [vmem:[%s6157_s1 + $0x100] sm:$0xff] }
  0x7a   :  { %3842 = vmatprep.subr.mxu1 %v4248_v43  ;;  %3816 = vmatpush3.msra.mxu0 %v5015_v33  ;;  %v1074_v41 = vand.u32 4294901760, %v1073_v22  ;;  %v5140_v50 = vsub.f32 %v68_v30, %v5111_v24  ;;  %v1107_v37 = vand.u32 4294901760, %v5121_v42  ;;  %v1088_v32 = vand.u32 4294901760, %v1087_v53 }
  0x7b   :  { %3843 = vmatpush3.msra.mxu1 %v1046_v40  ;;  %3817 = vmatprep.subr.mxu0 %v4248_v43  ;;  %v1095_v62 = vand.u32 4294901760, %v1094_v13  ;;  %v5182_v40 = vsub.f32 %v65_v46, %v5157_v61  ;;  %v5187_v30 = vand.u32 4294901760, %v63_v20  ;;  %v1128_v22 = vand.u32 4294901760, %v5170_v23 }
  0x7c   :  { %3844 = vmatprep.subr.mxu1 %v4248_v43  ;;  %3818 = vmatpush3.msra.mxu0 %v5028_v2  ;;  %v1114_v35 = vand.u32 4294901760, %v5140_v50  ;;  %v1108_v45 = vsub.f32 %v5121_v42, %v1107_v37  ;;  %v1034_v46 = vsub.f32 %v5161_v51, %v1033_v4 }
  0x7d   :  { %3845 = vmatpush3.msra.mxu1 %v1053_v3  ;;  %3819 = vmatprep.subr.mxu0 %v4248_v43  ;;  %v1121_v3 = vand.u32 4294901760, %v5155_v47  ;;  %v1135_v53 = vand.u32 4294901760, %v5182_v40  ;;  %v1129_v13 = vsub.f32 %v5170_v23, %v1128_v22 }
  0x7e   :  { %3846 = vmatprep.subr.mxu1 %v4248_v43  ;;  %3820 = vmatpush3.msra.mxu0 %v5036_v38  ;;  %v1109_v55 = vand.u32 4294901760, %v1108_v45  ;;  %v1035_v25 = vand.u32 4294901760, %v1034_v46  ;;  %v1143_v45 = vsub.f32 %v5195_v15, %v1142_v26 }
  0x7f   :  { %3847 = vmatpush3.msra.mxu1 %v1060_v16  ;;  %3821 = vmatprep.subr.mxu0 %v4248_v43  ;;  %v1115_v16 = vsub.f32 %v5140_v50, %v1114_v35  ;;  %v1122_v48 = vsub.f32 %v5155_v47, %v1121_v3 }
  0x80   :  { %3848 = vmatprep.subr.mxu1 %v4248_v43  ;;  %3822 = vmatpush3.msra.mxu0 %v5049_v12 }
  0x81   :  { %3849 = vmatpush3.msra.mxu1 %v1067_v60  ;;  %3823 = vmatprep.subr.mxu0 %v4248_v43  ;;  %v5205_v60 = vsub.f32 %v63_v20, %v5187_v30 }
  0x82   :  { %3850 = vmatprep.subr.mxu1 %v4248_v43  ;;  %3824 = vmatpush3.msra.mxu0 %v5076_v59 }
  0x83   :  { %3851 = vmatpush3.msra.mxu1 %v1074_v41  ;;  %3825 = vmatprep.subr.mxu0 %v4248_v43  ;;  %v1116_v41 = vand.u32 4294901760, %v1115_v16  ;;  %v1149_v20 = vand.u32 4294901760, %v5205_v60 }
  0x84   :  { %3852 = vmatprep.subr.mxu1 %v4248_v43  ;;  %3826 = vmatpush3.msra.mxu0 %v5092_v5 }
  0x85   :  { %3853 = vmatpush3.msra.mxu1 %v1081_v29  ;;  %3827 = vmatprep.subr.mxu0 %v4248_v43  ;;  %v1123_v29 = vand.u32 4294901760, %v1122_v48  ;;  %v1150_v16 = vsub.f32 %v5205_v60, %v1149_v20 }
  0x86   :  { %3854 = vmatprep.subr.mxu1 %v4248_v43  ;;  %3828 = vmatpush3.msra.mxu0 %v5111_v24 }
  0x87   :  { %3855 = vmatpush3.msra.mxu1 %v1088_v32  ;;  %3829 = vmatprep.subr.mxu0 %v4248_v43  ;;  %v1136_v32 = vsub.f32 %v5182_v40, %v1135_v53  ;;  %v1151_v48 = vand.u32 4294901760, %v1150_v16 }
  0x88   :  { %3856 = vmatprep.subr.mxu1 %v4248_v43  ;;  %3830 = vmatpush3.msra.mxu0 %v5126_v21 }
  0x89   :  { %3857 = vmatpush3.msra.mxu1 %v1095_v62  ;;  %3831 = vmatprep.subr.mxu0 %v4248_v43  ;;  %v1130_v62 = vand.u32 4294901760, %v1129_v13 }
  0x8a   :  { %3858 = vmatprep.subr.mxu1 %v4248_v43  ;;  %3832 = vmatpush3.msra.mxu0 %v5142_v7 }
  0x8b   :  { %3859 = vmatpush3.msra.mxu1 %v1102_v11  ;;  %3833 = vmatprep.subr.mxu0 %v4248_v43  ;;  %v1137_v11 = vand.u32 4294901760, %v1136_v32 }
  0x8c   :  { %3860 = vmatprep.subr.mxu1 %v4248_v43  ;;  %3834 = vmatpush3.msra.mxu0 %v5157_v61 }
  0x8d   :  { %3861 = vmatpush3.msra.mxu1 %v1109_v55  ;;  %3835 = vmatprep.subr.mxu0 %v4248_v43  ;;  %v1144_v55 = vand.u32 4294901760, %v1143_v45 }
  0x8e   :  { %3862 = vmatprep.subr.mxu1 %v4248_v43  ;;  %3836 = vmatpush3.msra.mxu0 %v5175_v63 }
  0x8f   :  { %3863 = vmatpush3.msra.mxu1 %v1116_v41  ;;  %3837 = vmatprep.subr.mxu0 %v4248_v43 }
  0x90   :  { %3864 = vmatprep.subr.mxu1 %v4248_v43  ;;  %3838 = vmatpush3.msra.mxu0 %v5187_v30 }
  0x91   :  { %3839 = vmatprep.mubr.msk.f32.mxu0 %vm4249_vm0, %v4248_v43  ;;  %3865 = vmatpush3.msra.mxu1 %v1123_v29 }
  0x92   :  { %3840 = vmatmul.mubr.f32.vlgmr.msra.gmra.mxu0 %v1035_v25  ;;  %3866 = vmatprep.subr.mxu1 %v4248_v43 }
  0x93   :  { %3877 = vmatprep.subr.mxu0 %v4248_v43  ;;  %3867 = vmatpush3.msra.mxu1 %v1130_v62 }
  0x94   :  { %3878 = vmatpush3.msra.mxu0 %v4986_v1  ;;  %3868 = vmatprep.subr.mxu1 %v4248_v43 }
  0x95   :  { %3879 = vmatprep.subr.mxu0 %v4248_v43  ;;  %3869 = vmatpush3.msra.mxu1 %v1137_v11 }
  0x96   :  { %3880 = vmatpush3.msra.mxu0 %v5000_v57  ;;  %3870 = vmatprep.subr.mxu1 %v4248_v43  ;;  %v3385_v57 = vld [vmem:[%s6159_s2] ss:$0 sm:$0xff] }
  0x97   :  { %3881 = vmatprep.subr.mxu0 %v4248_v43  ;;  %3871 = vmatpush3.msra.mxu1 %v1144_v55 }
  0x98   :  { %3882 = vmatpush3.msra.mxu0 %v5013_v49  ;;  %3872 = vmatprep.subr.mxu1 %v4248_v43  ;;  %v1599_v49 = vld [vmem:[%s6160_s3 + $0x38] sm:$0xff] }
  0x99   :  { %3883 = vmatprep.subr.mxu0 %v4248_v43  ;;  %3873 = vmatpush3.msra.mxu1 %v1151_v48 }
  0x9a   :  { %3874 = vmatprep.mubr.msk.f32.mxu1 %vm4249_vm0, %v4248_v43  ;;  %3884 = vmatpush3.msra.mxu0 %v5026_v39 }
  0x9b   :  { %3875 = vmatmul.mubr.f32.vlgmr.msra.gmra.mxu1 %v5128_v28  ;;  %3885 = vmatprep.subr.mxu0 %v4248_v43 }
  0x9c   :  { %3912 = vmatprep.subr.mxu1 %v4248_v43  ;;  %3886 = vmatpush3.msra.mxu0 %v5041_v54 }
  0x9d   :  { %3913 = vmatpush3.msra.mxu1 %v4963_v8  ;;  %3887 = vmatprep.subr.mxu0 %v4248_v43 }
  0x9e   :  { %3914 = vmatprep.subr.mxu1 %v4248_v43  ;;  %3888 = vmatpush3.msra.mxu0 %v5057_v56 }
  0x9f   :  { %3915 = vmatpush3.msra.mxu1 %v4974_v6  ;;  %3889 = vmatprep.subr.mxu0 %v4248_v43 }
  0xa0   :  { %3916 = vmatprep.subr.mxu1 %v4248_v43  ;;  %3890 = vmatpush3.msra.mxu0 %v5066_v44 }
  0xa1   :  { %3917 = vmatpush3.msra.mxu1 %v4988_v58  ;;  %3891 = vmatprep.subr.mxu0 %v4248_v43 }
  0xa2   :  { %3918 = vmatprep.subr.mxu1 %v4248_v43  ;;  %3892 = vmatpush3.msra.mxu0 %v5082_v0  ;;  %v1596_v0 = vld [vmem:[%s6160_s3 + $0x20] sm:$0xff] }
  0xa3   :  { %3919 = vmatpush3.msra.mxu1 %v5002_v36  ;;  %3893 = vmatprep.subr.mxu0 %v4248_v43 }
  0xa4   :  { %3920 = vmatprep.subr.mxu1 %v4248_v43  ;;  %3894 = vmatpush3.msra.mxu0 %v5106_v17  ;;  %v5450_v17 = vand.u32 4294901760, %v1596_v0 }
  0xa5   :  { %3921 = vmatpush3.msra.mxu1 %v5015_v33  ;;  %3895 = vmatprep.subr.mxu0 %v4248_v43 }
  0xa6   :  { %3922 = vmatprep.subr.mxu1 %v4248_v43  ;;  %3896 = vmatpush3.msra.mxu0 %v5121_v42 }
  0xa7   :  { %3923 = vmatpush3.msra.mxu1 %v5028_v2  ;;  %3897 = vmatprep.subr.mxu0 %v4248_v43 }
  0xa8   :  { %3924 = vmatprep.subr.mxu1 %v4248_v43  ;;  %3898 = vmatpush3.msra.mxu0 %v5140_v50  ;;  %v5464_v50 = vsub.f32 %v1596_v0, %v5450_v17 }
  0xa9   :  { %3925 = vmatpush3.msra.mxu1 %v5036_v38  ;;  %3899 = vmatprep.subr.mxu0 %v4248_v43 }
  0xaa   :  { %3926 = vmatprep.subr.mxu1 %v4248_v43  ;;  %3900 = vmatpush3.msra.mxu0 %v5155_v47 }
  0xab   :  { %3927 = vmatpush3.msra.mxu1 %v5049_v12  ;;  %3901 = vmatprep.subr.mxu0 %v4248_v43 }
  0xac   :  { %3928 = vmatprep.subr.mxu1 %v4248_v43  ;;  %3902 = vmatpush3.msra.mxu0 %v5170_v23 }
  0xad   :  { %3929 = vmatpush3.msra.mxu1 %v5076_v59  ;;  %3903 = vmatprep.subr.mxu0 %v4248_v43 }
  0xae   :  { %3930 = vmatprep.subr.mxu1 %v4248_v43  ;;  %3904 = vmatpush3.msra.mxu0 %v5182_v40 }
  0xaf   :  { %3931 = vmatpush3.msra.mxu1 %v5092_v5  ;;  %3905 = vmatprep.subr.mxu0 %v4248_v43 }
  0xb0   :  { %3932 = vmatprep.subr.mxu1 %v4248_v43  ;;  %3906 = vmatpush3.msra.mxu0 %v5195_v15  ;;  %v1592_v15 = vld [vmem:[%s6160_s3] sm:$0xff] }
  0xb1   :  { %3933 = vmatpush3.msra.mxu1 %v5111_v24  ;;  %3907 = vmatprep.subr.mxu0 %v4248_v43  ;;  %v5511_v41 = vand.u32 4294901760, %v1592_v15 }
  0xb2   :  { %3934 = vmatprep.subr.mxu1 %v4248_v43  ;;  %3908 = vmatpush3.msra.mxu0 %v5205_v60 }
  0xb3   :  { %3909 = vmatprep.mubr.msk.f32.mxu0 %vm4249_vm0, %v4248_v43  ;;  %3935 = vmatpush3.msra.mxu1 %v5126_v21  ;;  %v5521_v32 = vsub.f32 %v1592_v15, %v5511_v41 }
  0xb4   :  { %3910 = vmatmul.mubr.f32.vlgmr.msra.gmra.mxu0 %v5161_v51  ;;  %3936 = vmatprep.subr.mxu1 %v4248_v43 }
  0xb5   :  { %3947 = vmatprep.subr.mxu0 %v4248_v43  ;;  %3937 = vmatpush3.msra.mxu1 %v5142_v7  ;;  %v1761_v62 = vand.u32 4294901760, %v5521_v32 }
  0xb6   :  { %3948 = vmatpush3.msra.mxu0 %v1044_v19  ;;  %3938 = vmatprep.subr.mxu1 %v4248_v43 }
  0xb7   :  { %3949 = vmatprep.subr.mxu0 %v4248_v43  ;;  %3939 = vmatpush3.msra.mxu1 %v5157_v61  ;;  %v1762_v11 = vsub.f32 %v5521_v32, %v1761_v62 }
  0xb8   :  { %3950 = vmatpush3.msra.mxu0 %v1051_v18  ;;  %3940 = vmatprep.subr.mxu1 %v4248_v43 }
  0xb9   :  { %3951 = vmatprep.subr.mxu0 %v4248_v43  ;;  %3941 = vmatpush3.msra.mxu1 %v5175_v63  ;;  %v1763_v16 = vand.u32 4294901760, %v1762_v11 }
  0xba   :  { %3952 = vmatpush3.msra.mxu0 %v1058_v31  ;;  %3942 = vmatprep.subr.mxu1 %v4248_v43  ;;  %v1597_v31 = vld [vmem:[%s6160_s3 + $0x28] sm:$0xff] }
  0xbb   :  { %3953 = vmatprep.subr.mxu0 %v4248_v43  ;;  %3943 = vmatpush3.msra.mxu1 %v5187_v30  ;;  %v5436_v44 = vand.u32 4294901760, %v1597_v31 }
  0xbc   :  { %3944 = vmatprep.mubr.msk.f32.mxu1 %vm4249_vm0, %v4248_v43  ;;  %3954 = vmatpush3.msra.mxu0 %v1065_v14 }
  0xbd   :  { %3945 = vmatmul.mubr.f32.vlgmr.msra.gmra.mxu1 %v1033_v4  ;;  %3955 = vmatprep.subr.mxu0 %v4248_v43 }
  0xbe   :  { %3982 = vmatprep.subr.mxu1 %v4248_v43  ;;  %3956 = vmatpush3.msra.mxu0 %v1072_v52 }
  0xbf   :  { %3983 = vmatpush3.msra.mxu1 %v4963_v8  ;;  %3957 = vmatprep.subr.mxu0 %v4248_v43 }
  0xc0   :  { %3984 = vmatprep.subr.mxu1 %v4248_v43  ;;  %3958 = vmatpush3.msra.mxu0 %v1079_v9 }
  0xc1   :  { %3985 = vmatpush3.msra.mxu1 %v4974_v6  ;;  %3959 = vmatprep.subr.mxu0 %v4248_v43 }
  0xc2   :  { %3986 = vmatprep.subr.mxu1 %v4248_v43  ;;  %3960 = vmatpush3.msra.mxu0 %v1086_v10  ;;  %v5448_v10 = vsub.f32 %v1597_v31, %v5436_v44 }
  0xc3   :  { %3987 = vmatpush3.msra.mxu1 %v4988_v58  ;;  %3961 = vmatprep.subr.mxu0 %v4248_v43 }
  0xc4   :  { %3988 = vmatprep.subr.mxu1 %v4248_v43  ;;  %3962 = vmatpush3.msra.mxu0 %v1093_v34  ;;  %v1595_v34 = vld [vmem:[%s6160_s3 + $0x18] sm:$0xff] }
  0xc5   :  { %3989 = vmatpush3.msra.mxu1 %v5002_v36  ;;  %3963 = vmatprep.subr.mxu0 %v4248_v43 }
  0xc6   :  { %3990 = vmatprep.subr.mxu1 %v4248_v43  ;;  %3964 = vmatpush3.msra.mxu0 %v1100_v27  ;;  %v1594_v27 = vld [vmem:[%s6160_s3 + $0x10] sm:$0xff] }
  0xc7   :  { %3991 = vmatpush3.msra.mxu1 %v5015_v33  ;;  %3965 = vmatprep.subr.mxu0 %v4248_v43  ;;  %v5417_v33 = vand.u32 4294901760, %v1599_v49  ;;  %v5477_v51 = vand.u32 4294901760, %v1594_v27 }
  0xc8   :  { %3992 = vmatprep.subr.mxu1 %v4248_v43  ;;  %3966 = vmatpush3.msra.mxu0 %v1107_v37  ;;  %v1733_v37 = vand.u32 4294901760, %v5464_v50 }
  0xc9   :  { %3993 = vmatpush3.msra.mxu1 %v5028_v2  ;;  %3967 = vmatprep.subr.mxu0 %v4248_v43  ;;  %v1598_v2 = vld [vmem:[%s6160_s3 + $0x30] sm:$0xff] }
  0xca   :  { %3994 = vmatprep.subr.mxu1 %v4248_v43  ;;  %3968 = vmatpush3.msra.mxu0 %v1114_v35  ;;  %v5425_v54 = vand.u32 4294901760, %v1598_v2  ;;  %v1734_v40 = vsub.f32 %v5464_v50, %v1733_v37 }
  0xcb   :  { %3995 = vmatpush3.msra.mxu1 %v5036_v38  ;;  %3969 = vmatprep.subr.mxu0 %v4248_v43  ;;  %v5423_v38 = vsub.f32 %v1599_v49, %v5417_v33 }
  0xcc   :  { %3996 = vmatprep.subr.mxu1 %v4248_v43  ;;  %3970 = vmatpush3.msra.mxu0 %v1121_v3  ;;  %v5434_v14 = vsub.f32 %v1598_v2, %v5425_v54 }
  0xcd   :  { %3997 = vmatpush3.msra.mxu1 %v5049_v12  ;;  %3971 = vmatprep.subr.mxu0 %v4248_v43  ;;  %v1712_v56 = vand.u32 4294901760, %v5423_v38 }
  0xce   :  { %3998 = vmatprep.subr.mxu1 %v4248_v43  ;;  %3972 = vmatpush3.msra.mxu0 %v1128_v22  ;;  %v1719_v9 = vand.u32 4294901760, %v5434_v14  ;;  %v1735_v22 = vand.u32 4294901760, %v1734_v40 }
  0xcf   :  { %3999 = vmatpush3.msra.mxu1 %v5076_v59  ;;  %3973 = vmatprep.subr.mxu0 %v4248_v43 }
  0xd0   :  { %4000 = vmatprep.subr.mxu1 %v4248_v43  ;;  %3974 = vmatpush3.msra.mxu0 %v1135_v53 }
  0xd1   :  { %4001 = vmatpush3.msra.mxu1 %v5092_v5  ;;  %3975 = vmatprep.subr.mxu0 %v4248_v43  ;;  %v1713_v5 = vsub.f32 %v5423_v38, %v1712_v56 }
  0xd2   :  { %4002 = vmatprep.subr.mxu1 %v4248_v43  ;;  %3976 = vmatpush3.msra.mxu0 %v1142_v26 }
  0xd3   :  { %4003 = vmatpush3.msra.mxu1 %v5111_v24  ;;  %3977 = vmatprep.subr.mxu0 %v4248_v43  ;;  %v1714_v42 = vand.u32 4294901760, %v1713_v5 }
  0xd4   :  { %4004 = vmatprep.subr.mxu1 %v4248_v43  ;;  %3978 = vmatpush3.msra.mxu0 %v1149_v20 }
  0xd5   :  { %3979 = vmatprep.mubr.msk.f32.mxu0 %vm4249_vm0, %v4248_v43  ;;  %4005 = vmatpush3.msra.mxu1 %v5126_v21  ;;  %v1720_v21 = vsub.f32 %v5434_v14, %v1719_v9 }
  0xd6   :  { %3980 = vmatmul.mubr.f32.vlgmr.msra.gmra.mxu0 %v5128_v28  ;;  %4006 = vmatprep.subr.mxu1 %v4248_v43 }
  0xd7   :  { %4007 = vmatpush3.msra.mxu1 %v5142_v7  ;;  %4014 = vmatprep.mubr.msk.f32.mxu1 %vm4249_vm0, %v4248_v43  ;;  %v5467_v7 = vand.u32 4294901760, %v1595_v34  ;;  %v1721_v47 = vand.u32 4294901760, %v1720_v21 }
  0xd8   :  { %4008 = vmatprep.subr.mxu1 %v4248_v43  ;;  %4017 = vmatprep.subr.mxu0 %v4248_v43 }
  0xd9   :  { %4009 = vmatpush3.msra.mxu1 %v5157_v61  ;;  %4033 = vmatprep.mubr.msk.f32.mxu0 %vm4249_vm0, %v4248_v43  ;;  %v5481_v23 = vsub.f32 %v1595_v34, %v5467_v7 }
  0xda   :  { %4010 = vmatprep.subr.mxu1 %v4248_v43  ;;  %4018 = vmatpush3.msra.mxu0 %v5417_v33 }
  0xdb   :  { %4011 = vmatpush3.msra.mxu1 %v5175_v63  ;;  %4019 = vmatprep.subr.mxu0 %v4248_v43  ;;  %v1593_v63 = vld [vmem:[%s6160_s3 + $0x8] sm:$0xff]  ;;  %v1740_v4 = vand.u32 4294901760, %v5481_v23 }
  0xdc   :  { %4012 = vmatprep.subr.mxu1 %v4248_v43  ;;  %4020 = vmatpush3.msra.mxu0 %v5425_v54  ;;  %v5493_v3 = vand.u32 4294901760, %v1593_v63 }
  0xdd   :  { %4013 = vmatpush3.msra.mxu1 %v5187_v30  ;;  %4021 = vmatprep.subr.mxu0 %v4248_v43  ;;  %v5491_v30 = vsub.f32 %v1594_v27, %v5477_v51  ;;  %v1741_v46 = vsub.f32 %v5481_v23, %v1740_v4 }
  0xde   :  { %4015 = vmatmul.mubr.f32.vlgmr.msra.gmra.mxu1 %v5128_v28  ;;  %4036 = vmatprep.subr.mxu1 %v4248_v43  ;;  %v1726_v28 = vand.u32 4294901760, %v5448_v10  ;;  %v5504_v53 = vsub.f32 %v1593_v63, %v5493_v3 }
  0xdf   :  { %4052 = vmatprep.mubr.msk.f32.mxu1 %vm4249_vm0, %v4248_v43  ;;  %4022 = vmatpush3.msra.mxu0 %v5436_v44  ;;  %v1747_v60 = vand.u32 4294901760, %v5491_v30  ;;  %v1742_v29 = vand.u32 4294901760, %v1741_v46 }
  0xe0   :  { %4023 = vmatprep.subr.mxu0 %v4248_v43  ;;  %4037 = vmatpush3.msra.mxu1 %v1714_v42  ;;  %v1727_v61 = vsub.f32 %v5448_v10, %v1726_v28  ;;  %v1754_v26 = vand.u32 4294901760, %v5504_v53 }
  0xe1   :  { %4024 = vmatpush3.msra.mxu0 %v5450_v17  ;;  %4038 = vmatprep.subr.mxu1 %v4248_v43  ;;  %v1748_v13 = vsub.f32 %v5491_v30, %v1747_v60 }
  0xe2   :  { %4025 = vmatprep.subr.mxu0 %v4248_v43  ;;  %4039 = vmatpush3.msra.mxu1 %v1721_v47  ;;  %v1728_v35 = vand.u32 4294901760, %v1727_v61  ;;  %v1755_v25 = vsub.f32 %v5504_v53, %v1754_v26 }
  0xe3   :  { %4026 = vmatpush3.msra.mxu0 %v5467_v7  ;;  %4040 = vmatprep.subr.mxu1 %v4248_v43  ;;  %v1749_v20 = vand.u32 4294901760, %v1748_v13 }
  0xe4   :  { %4027 = vmatprep.subr.mxu0 %v4248_v43  ;;  %4041 = vmatpush3.msra.mxu1 %v1728_v35  ;;  %v1756_v45 = vand.u32 4294901760, %v1755_v25 }
  0xe5   :  { %4028 = vmatpush3.msra.mxu0 %v5477_v51  ;;  %4042 = vmatprep.subr.mxu1 %v4248_v43 }
  0xe6   :  { %4029 = vmatprep.subr.mxu0 %v4248_v43  ;;  %4043 = vmatpush3.msra.mxu1 %v1735_v22 }
  0xe7   :  { %4030 = vmatpush3.msra.mxu0 %v5493_v3  ;;  %4044 = vmatprep.subr.mxu1 %v4248_v43 }
  0xe8   :  { %4031 = vmatprep.subr.mxu0 %v4248_v43  ;;  %4045 = vmatpush3.msra.mxu1 %v1742_v29 }
  0xe9   :  { %4032 = vmatpush3.msra.mxu0 %v5511_v41  ;;  %4046 = vmatprep.subr.mxu1 %v4248_v43 }
  0xea   :  { %4055 = vmatprep.subr.mxu0 %v4248_v43  ;;  %4047 = vmatpush3.msra.mxu1 %v1749_v20 }
  0xeb   :  { %4048 = vmatprep.subr.mxu1 %v4248_v43 }
  0xec   :  { %4049 = vmatpush3.msra.mxu1 %v1756_v45 }
  0xed   :  { %v3419_v8 = vpop.f32.mrf.mxu0  ;;  %4050 = vmatprep.subr.mxu1 %v4248_v43 }
  0xee   :  { %4051 = vmatpush3.msra.mxu1 %v1763_v16 }
  0xef   :  { %v3420_v6 = vpop.f32.mrf.mxu0  ;;  %4074 = vmatprep.subr.mxu1 %v4248_v43 }
  0xf0   :  { %v3421_v58 = vadd.f32 %v3420_v6, %v3419_v8 }
  0xf2   :  { %v197_v19 = vadd.f32 %v3421_v58, %v3385_v57 }
  0xf5   :  { %v3454_v1 = vpop.f32.mrf.mxu1 }
  0xf7   :  { %v3455_v36 = vpop.f32.mrf.mxu1 }
  0xf8   :  { %v3456_v39 = vadd.f32 %v3455_v36, %v3454_v1 }
  0xfa   :  { %v429_v59 = vadd.f32 %v3456_v39, %v197_v19 }
 0x10e   :  { %v3489_v18 = vpop.f32.mrf.mxu0 }
 0x110   :  { %v3490_v12 = vpop.f32.mrf.mxu0 }
 0x111   :  { %v3491_v52 = vadd.f32 %v3490_v12, %v3489_v18 }
 0x113   :  { %v5453_v24 = vadd.f32 %v3491_v52, %v429_v59 }
 0x117   :  { %v3524_v55 = vpop.f32.mrf.mxu1 }
 0x119   :  { %v3525_v48 = vpop.f32.mrf.mxu1 }
 0x11a   :  { %v3526_v8 = vadd.f32 %v3525_v48, %v3524_v55 }
 0x11c   :  { %v675_v58 = vadd.f32 %v3526_v8, %v5453_v24  ;;  %v2158_v8 = vld [vmem:[%s6161_s5 + $0x50] sm:$0xff] }
 0x130   :  { %v3559_v6 = vpop.f32.mrf.mxu0 }
 0x132   :  { %v3560_v1 = vpop.f32.mrf.mxu0 }
 0x133   :  { %v3561_v57 = vadd.f32 %v3560_v1, %v3559_v6 }
 0x135   :  { %v843_v36 = vadd.f32 %v3561_v57, %v675_v58 }
 0x139   :  { %v3594_v49 = vpop.f32.mrf.mxu1 }
 0x13b   :  { %v3595_v19 = vpop.f32.mrf.mxu1 }
 0x13c   :  { %v3596_v39 = vadd.f32 %v3595_v19, %v3594_v49 }
 0x13e   :  { %v947_v2 = vadd.f32 %v3596_v39, %v843_v36  ;;  %v2157_v36 = vld [vmem:[%s6161_s5 + $0x48] sm:$0xff] }
 0x152   :  { %v1037_v18 = vpop.f32.mrf.mxu0 }
 0x153   :  { %v1038_v31 = vadd.f32 %v1037_v18, %v947_v2  ;;  %v2155_v18 = vld [vmem:[%s6161_s5 + $0x38] sm:$0xff] }
 0x154   :  { %v3841_v12 = vpop.f32.mrf.mxu0 }
 0x15b   :  { %v1188_v59 = vpop.f32.mrf.mxu1 }
 0x15c   :  { %v1189_v27 = vadd.f32 %v1188_v59, %v1038_v31 }
 0x15d   :  { %v3876_v52 = vpop.f32.mrf.mxu1 }
 0x15e   :  { %v5727_v52 = vand.u32 4294901760, %v2158_v8 }
 0x174   :  { %v1292_v0 = vpop.f32.mrf.mxu0 }
 0x175   :  { %v1293_v61 = vadd.f32 %v1292_v0, %v1189_v27  ;;  %v2154_v0 = vld [vmem:[%s6161_s5 + $0x30] sm:$0xff]  ;;  %v2152_v27 = vld [vmem:[%s6161_s5 + $0x20] sm:$0xff] }
 0x176   :  { %v3911_v5 = vpop.f32.mrf.mxu0 }
 0x17d   :  { %v1381_v34 = vpop.f32.mrf.mxu1 }
 0x17e   :  { %v1382_v24 = vadd.f32 %v1381_v34, %v1293_v61 }
 0x17f   :  { %v3946_v42 = vpop.f32.mrf.mxu1 }
 0x196   :  { %v1500_v21 = vpop.f32.mrf.mxu0 }
 0x197   :  { %v1501_v63 = vadd.f32 %v1500_v21, %v1382_v24  ;;  %v5736_v21 = vand.u32 4294901760, %v2157_v36  ;;  %v5745_v24 = vsub.f32 %v2158_v8, %v5727_v52 }
 0x198   :  { %v3981_v47 = vpop.f32.mrf.mxu0 }
 0x19e   :  { %v1587_v35 = vpop.f32.mrf.mxu1 }
 0x19f   :  { %v1588_v40 = vadd.f32 %v1587_v35, %v1501_v63  ;;  %v5747_v63 = vand.u32 4294901760, %v2155_v18  ;;  %v2151_v35 = vld [vmem:[%s6161_s5 + $0x18] sm:$0xff] }
 0x1a0   :  { %v4016_v15 = vpop.f32.mrf.mxu1 }
 0x1a1   :  { %v1591_v22 = vmax.f32 %v1588_v40, 0.0 }
 0x1a3   :  { %v1608_v46 = vsel %vm1606_vm1, %v1591_v22, 0  ;;  %v5757_v22 = vsub.f32 %v2157_v36, %v5736_v21 }
 0x1a4   :  { %v5538_v13 = vand.u32 4294901760, %v1608_v46 }
 0x1a6   :  { %v1684_v29 = vsub.f32 %v1608_v46, %v5538_v13  ;;  %4053 = vmatmul.mubr.f32.vlgmr.msra.gmra.mxu1 %v5538_v13  ;;  %v5759_v46 = vand.u32 4294901760, %v2154_v0 }
 0x1a7   :  { %4075 = vmatpush3.msra.mxu1 %v5417_v33  ;;  %4090 = vmatprep.mubr.msk.f32.mxu1 %vm4249_vm0, %v4248_v43 }
 0x1a8   :  { %v1685_v20 = vand.u32 4294901760, %v1684_v29  ;;  %4076 = vmatprep.subr.mxu1 %v4248_v43 }
 0x1a9   :  { %4077 = vmatpush3.msra.mxu1 %v5425_v54 }
 0x1aa   :  { %4078 = vmatprep.subr.mxu1 %v4248_v43  ;;  %v1686_v25 = vsub.f32 %v1684_v29, %v1685_v20 }
 0x1ab   :  { %4079 = vmatpush3.msra.mxu1 %v5436_v44 }
 0x1ac   :  { %4080 = vmatprep.subr.mxu1 %v4248_v43  ;;  %v1687_v45 = vand.u32 4294901760, %v1686_v25  ;;  %v5767_v25 = vsub.f32 %v2155_v18, %v5747_v63 }
 0x1ad   :  { %4081 = vmatpush3.msra.mxu1 %v5450_v17 }
 0x1ae   :  { %4082 = vmatprep.subr.mxu1 %v4248_v43  ;;  %4034 = vmatmul.mubr.f32.vlgmr.msra.gmra.mxu0 %v1687_v45  ;;  %v5769_v45 = vand.u32 4294901760, %v2152_v27 }
 0x1af   :  { %4056 = vmatpush3.msra.mxu0 %v5423_v38  ;;  %4083 = vmatpush3.msra.mxu1 %v5467_v7 }
 0x1b0   :  { %4057 = vmatprep.subr.mxu0 %v4248_v43  ;;  %4084 = vmatprep.subr.mxu1 %v4248_v43 }
 0x1b1   :  { %4058 = vmatpush3.msra.mxu0 %v5434_v14  ;;  %4085 = vmatpush3.msra.mxu1 %v5477_v51  ;;  %v2167_v14 = vld [vmem:[%s6161_s5 + $0x98] sm:$0xff] }
 0x1b2   :  { %4059 = vmatprep.subr.mxu0 %v4248_v43  ;;  %4086 = vmatprep.subr.mxu1 %v4248_v43 }
 0x1b3   :  { %4060 = vmatpush3.msra.mxu0 %v5448_v10  ;;  %4087 = vmatpush3.msra.mxu1 %v5493_v3  ;;  %v2166_v10 = vld [vmem:[%s6161_s5 + $0x90] sm:$0xff] }
 0x1b4   :  { %4061 = vmatprep.subr.mxu0 %v4248_v43  ;;  %4088 = vmatprep.subr.mxu1 %v4248_v43 }
 0x1b5   :  { %4062 = vmatpush3.msra.mxu0 %v5464_v50  ;;  %4089 = vmatpush3.msra.mxu1 %v5511_v41  ;;  %v2164_v50 = vld [vmem:[%s6161_s5 + $0x80] sm:$0xff] }
 0x1b6   :  { %4063 = vmatprep.subr.mxu0 %v4248_v43  ;;  %4091 = vmatmul.mubr.f32.vlgmr.msra.gmra.mxu1 %v1685_v20  ;;  %v2349_v20 = vand.u32 4294901760, %v5745_v24 }
 0x1b7   :  { %4112 = vmatprep.subr.mxu1 %v4248_v43  ;;  %4064 = vmatpush3.msra.mxu0 %v5481_v23  ;;  %v2163_v23 = vld [vmem:[%s6161_s5 + $0x78] sm:$0xff] }
 0x1b8   :  { %4113 = vmatpush3.msra.mxu1 %v5417_v33  ;;  %4065 = vmatprep.subr.mxu0 %v4248_v43  ;;  %v2170_v33 = vld [vmem:[%s6161_s5 + $0xb0] sm:$0xff] }
 0x1b9   :  { %4114 = vmatprep.subr.mxu1 %v4248_v43  ;;  %4066 = vmatpush3.msra.mxu0 %v5491_v30  ;;  %v5627_v38 = vand.u32 4294901760, %v2170_v33 }
 0x1ba   :  { %4115 = vmatpush3.msra.mxu1 %v5425_v54  ;;  %4067 = vmatprep.subr.mxu0 %v4248_v43  ;;  %v2169_v54 = vld [vmem:[%s6161_s5 + $0xa8] sm:$0xff] }
 0x1bb   :  { %4116 = vmatprep.subr.mxu1 %v4248_v43  ;;  %4068 = vmatpush3.msra.mxu0 %v5504_v53 }
 0x1bc   :  { %4117 = vmatpush3.msra.mxu1 %v5436_v44  ;;  %4069 = vmatprep.subr.mxu0 %v4248_v43  ;;  %v5638_v44 = vsub.f32 %v2170_v33, %v5627_v38  ;;  %v2148_v33 = vld [vmem:[%s6161_s5] sm:$0xff] }
 0x1bd   :  { %4118 = vmatprep.subr.mxu1 %v4248_v43  ;;  %4070 = vmatpush3.msra.mxu0 %v5521_v32 }
 0x1be   :  { %4071 = vmatprep.mubr.msk.f32.mxu0 %vm4249_vm0, %v4248_v43  ;;  %4119 = vmatpush3.msra.mxu1 %v5450_v17 }
 0x1bf   :  { %4072 = vmatmul.mubr.f32.vlgmr.msra.gmra.mxu0 %v1684_v29  ;;  %4093 = vmatprep.subr.mxu0 %v4248_v43 }
 0x1c0   :  { %4120 = vmatprep.subr.mxu1 %v4248_v43  ;;  %4094 = vmatpush3.msra.mxu0 %v1712_v56  ;;  %v5632_v56 = vand.u32 4294901760, %v2169_v54 }
 0x1c1   :  { %4121 = vmatpush3.msra.mxu1 %v5467_v7  ;;  %4095 = vmatprep.subr.mxu0 %v4248_v43  ;;  %v2301_v7 = vand.u32 4294901760, %v5638_v44 }
 0x1c2   :  { %4122 = vmatprep.subr.mxu1 %v4248_v43  ;;  %4096 = vmatpush3.msra.mxu0 %v1719_v9  ;;  %v5640_v9 = vand.u32 4294901760, %v2167_v14  ;;  %v5647_v17 = vsub.f32 %v2169_v54, %v5632_v56 }
 0x1c3   :  { %4123 = vmatpush3.msra.mxu1 %v5477_v51  ;;  %4097 = vmatprep.subr.mxu0 %v4248_v43  ;;  %v5659_v51 = vand.u32 4294901760, %v2164_v50  ;;  %v2302_v53 = vsub.f32 %v5638_v44, %v2301_v7 }
 0x1c4   :  { %4124 = vmatprep.subr.mxu1 %v4248_v43  ;;  %4098 = vmatpush3.msra.mxu0 %v1726_v28  ;;  %v5649_v28 = vand.u32 4294901760, %v2166_v10  ;;  %v2307_v30 = vand.u32 4294901760, %v5647_v17 }
 0x1c5   :  { %4125 = vmatpush3.msra.mxu1 %v5493_v3  ;;  %4099 = vmatprep.subr.mxu0 %v4248_v43  ;;  %v2303_v6 = vand.u32 4294901760, %v2302_v53  ;;  %v5787_v53 = vsub.f32 %v2152_v27, %v5769_v45 }
 0x1c6   :  { %4126 = vmatprep.subr.mxu1 %v4248_v43  ;;  %4100 = vmatpush3.msra.mxu0 %v1733_v37  ;;  %v5657_v37 = vsub.f32 %v2167_v14, %v5640_v9  ;;  %v5667_v3 = vsub.f32 %v2166_v10, %v5649_v28  ;;  %v2308_v11 = vsub.f32 %v5647_v17, %v2307_v30  ;;  %v2355_v14 = vand.u32 4294901760, %v5757_v22 }
 0x1c7   :  { %4127 = vmatpush3.msra.mxu1 %v5511_v41  ;;  %4128 = vmatprep.mubr.msk.f32.mxu1 %vm4249_vm0, %v4248_v43  ;;  %v5777_v10 = vsub.f32 %v2154_v0, %v5759_v46 }
 0x1c8   :  { %4101 = vmatprep.subr.mxu0 %v4248_v43  ;;  %4129 = vmatmul.mubr.f32.vlgmr.msra.gmra.mxu1 %v5538_v13  ;;  %v2313_v41 = vand.u32 4294901760, %v5657_v37  ;;  %v2319_v16 = vand.u32 4294901760, %v5667_v3  ;;  %v2309_v49 = vand.u32 4294901760, %v2308_v11  ;;  %v2356_v11 = vsub.f32 %v5757_v22, %v2355_v14 }
 0x1c9   :  { %4102 = vmatpush3.msra.mxu0 %v1740_v4  ;;  %4109 = vmatprep.mubr.msk.f32.mxu0 %vm4249_vm0, %v4248_v43  ;;  %v5669_v4 = vand.u32 4294901760, %v2163_v23  ;;  %v2367_v8 = vand.u32 4294901760, %v5777_v10 }
 0x1ca   :  { %4103 = vmatprep.subr.mxu0 %v4248_v43  ;;  %2427 = vmatprep.mubr.f32.mxu1 %v4248_v43  ;;  %v2314_v1 = vsub.f32 %v5657_v37, %v2313_v41  ;;  %v2320_v19 = vsub.f32 %v5667_v3, %v2319_v16 }
 0x1cb   :  { %4104 = vmatpush3.msra.mxu0 %v1747_v60  ;;  %v2161_v60 = vld [vmem:[%s6161_s5 + $0x68] sm:$0xff]  ;;  %v5693_v55 = vsub.f32 %v2163_v23, %v5669_v4  ;;  %2304 = vmatprep.subr.mxu1 %v2303_v6  ;;  %v2350_v23 = vsub.f32 %v5745_v24, %v2349_v20 }
 0x1cc   :  { %4105 = vmatprep.subr.mxu0 %v4248_v43  ;;  %v5682_v32 = vand.u32 4294901760, %v2161_v60  ;;  %v2315_v31 = vand.u32 4294901760, %v2314_v1  ;;  %2310 = vmatpush1.msra.mxu1 %v2309_v49  ;;  %v2321_v5 = vand.u32 4294901760, %v2320_v19  ;;  %v5799_v1 = vand.u32 4294901760, %v2148_v33 }
 0x1cd   :  { %4106 = vmatpush3.msra.mxu0 %v1754_v26  ;;  %v5680_v26 = vsub.f32 %v2164_v50, %v5659_v51  ;;  %v2331_v39 = vand.u32 4294901760, %v5693_v55  ;;  %v5779_v50 = vand.u32 4294901760, %v2151_v35  ;;  %v2351_v36 = vand.u32 4294901760, %v2350_v23 }
 0x1ce   :  { %4107 = vmatprep.subr.mxu0 %v4248_v43  ;;  %v5706_v57 = vsub.f32 %v2161_v60, %v5682_v32  ;;  %2316 = vmatprep.subr.mxu1 %v2315_v31  ;;  %v2361_v60 = vand.u32 4294901760, %v5767_v25  ;;  %v6240_v19 = vand.u32 4294901760, %v5787_v53  ;;  %v2357_v31 = vand.u32 4294901760, %v2356_v11 }
 0x1cf   :  { %4108 = vmatpush3.msra.mxu0 %v1761_v62  ;;  %v2160_v62 = vld [vmem:[%s6161_s5 + $0x60] sm:$0xff]  ;;  %v2325_v58 = vand.u32 4294901760, %v5680_v26  ;;  %v2332_v34 = vsub.f32 %v5693_v55, %v2331_v39  ;;  %2322 = vmatpush1.msra.mxu1 %v2321_v5  ;;  %v5797_v6 = vsub.f32 %v2151_v35, %v5779_v50  ;;  %v5815_v5 = vsub.f32 %v2148_v33, %v5799_v1 }
 0x1d0   :  { %4110 = vmatmul.mubr.f32.vlgmr.msra.gmra.mxu0 %v5538_v13  ;;  %2208 = vmatprep.subr.mxu0 %v5627_v38  ;;  %v5695_v48 = vand.u32 4294901760, %v2160_v62  ;;  %v2337_v59 = vand.u32 4294901760, %v5706_v57  ;;  %v2149_v13 = vld [vmem:[%s6161_s5 + $0x8] sm:$0xff]  ;;  %v2362_v49 = vsub.f32 %v5767_v25, %v2361_v60  ;;  %v2374_v27 = vsub.f32 %v5787_v53, %v6240_v19 }
 0x1d1   :  { %2271 = vmatprep.mubr.f32.mxu0 %v4248_v43  ;;  %2210 = vmatpush1.msra.mxu0 %v5632_v56  ;;  %v2326_v12 = vsub.f32 %v5680_v26, %v2325_v58  ;;  %v2333_v40 = vand.u32 4294901760, %v2332_v34  ;;  %v6239_v0 = vand.u32 4294901760, %v5797_v6 }
 0x1d2   :  { %2212 = vmatprep.subr.mxu0 %v5640_v9  ;;  %v5717_v2 = vsub.f32 %v2160_v62, %v5695_v48  ;;  %v2338_v61 = vsub.f32 %v5706_v57, %v2337_v59  ;;  %v5789_v62 = vand.u32 4294901760, %v2149_v13  ;;  %v2363_v34 = vand.u32 4294901760, %v2362_v49 }
 0x1d3   :  { %2214 = vmatpush1.msra.mxu0 %v5649_v28  ;;  %v2327_v47 = vand.u32 4294901760, %v2326_v12  ;;  %v2368_v12 = vsub.f32 %v5777_v10, %v2367_v8  ;;  %v2380_v35 = vsub.f32 %v5797_v6, %v6239_v0 }
 0x1d4   :  { %2216 = vmatprep.subr.mxu0 %v5659_v51  ;;  %v2343_v42 = vand.u32 4294901760, %v5717_v2  ;;  %v2339_v29 = vand.u32 4294901760, %v2338_v61  ;;  %v5807_v18 = vsub.f32 %v2149_v13, %v5789_v62 }
 0x1d5   :  { %2218 = vmatpush1.msra.mxu0 %v5669_v4  ;;  %2328 = vmatprep.subr.mxu1 %v2327_v47  ;;  %v2369_v61 = vand.u32 4294901760, %v2368_v12 }
 0x1d6   :  { %2220 = vmatprep.subr.mxu0 %v5682_v32  ;;  %v2344_v15 = vsub.f32 %v5717_v2, %v2343_v42  ;;  %2334 = vmatpush1.msra.mxu1 %v2333_v40  ;;  %v6238_v47 = vand.u32 4294901760, %v5807_v18  ;;  %v6237_v40 = vand.u32 4294901760, %v5815_v5 }
 0x1d7   :  { %2222 = vmatpush1.msra.mxu0 %v5695_v48  ;;  %2340 = vmatprep.subr.mxu1 %v2339_v29  ;;  %v2381_v29 = vand.u32 4294901760, %v2380_v35  ;;  %v3386_v35 = vld [vmem:[%s6162_s4] ss:$0 sm:$0xff] }
 0x1d8   :  { %2224 = vmatprep.subr.mxu0 %v5727_v52  ;;  %v2345_v54 = vand.u32 4294901760, %v2344_v15  ;;  %v2375_v15 = vand.u32 4294901760, %v2374_v27  ;;  %v2386_v13 = vsub.f32 %v5807_v18, %v6238_v47  ;;  %v2392_v33 = vsub.f32 %v5815_v5, %v6237_v40 }
 0x1d9   :  { %2226 = vmatpush1.msra.mxu0 %v5736_v21 }
 0x1da   :  { %2228 = vmatprep.subr.mxu0 %v5747_v63  ;;  %2346 = vmatpush1.msra.mxu1 %v2345_v54  ;;  %v2387_v54 = vand.u32 4294901760, %v2386_v13  ;;  %v2393_v23 = vand.u32 4294901760, %v2392_v33 }
 0x1db   :  { %2230 = vmatpush1.msra.mxu0 %v5759_v46  ;;  %2352 = vmatprep.subr.mxu1 %v2351_v36 }
 0x1dc   :  { %2232 = vmatprep.subr.mxu0 %v5769_v45  ;;  %2358 = vmatpush1.msra.mxu1 %v2357_v31 }
 0x1dd   :  { %2234 = vmatpush1.msra.mxu0 %v5779_v50  ;;  %2364 = vmatprep.subr.mxu1 %v2363_v34 }
 0x1de   :  { %2236 = vmatprep.subr.mxu0 %v5789_v62  ;;  %2370 = vmatpush1.msra.mxu1 %v2369_v61 }
 0x1df   :  { %2238 = vmatpush1.msra.mxu0 %v5799_v1  ;;  %2376 = vmatprep.subr.mxu1 %v2375_v15 }
 0x1e0   :  { %2453 = vmatprep.subr.mxu0 %v5638_v44  ;;  %2382 = vmatpush1.msra.mxu1 %v2381_v29 }
 0x1e1   :  { %2388 = vmatprep.subr.mxu1 %v2387_v54 }
 0x1e2   :  { %2394 = vmatpush1.msra.mxu1 %v2393_v23 }
 0x1e3   :  { %2557 = vmatprep.subr.mxu1 %v5627_v38 }
 0x266   :  { %v1800_v11 = vpop.f32.mrf.mxu1 }
 0x268   :  { %v4054_v36 = vpop.f32.mrf.mxu1 }
 0x26e   :  { %v1689_v49 = vpop.f32.mrf.mxu0 }
 0x26f   :  { %v1690_v15 = vadd.f32 %v3386_v35, %v1689_v49 }
 0x270   :  { %v4035_v31 = vpop.f32.mrf.mxu0 }
 0x271   :  { %v1801_v29 = vadd.f32 %v1800_v11, %v1690_v15  ;;  %v2168_v11 = vld [vmem:[%s6161_s5 + $0xa0] sm:$0xff] }
 0x276   :  { %v1969_v12 = vpop.f32.mrf.mxu1 }
 0x278   :  { %v4092_v34 = vpop.f32.mrf.mxu1 }
 0x27f   :  { %v1888_v27 = vpop.f32.mrf.mxu0 }
 0x280   :  { %v1889_v54 = vadd.f32 %v1888_v27, %v1801_v29  ;;  %v5892_v27 = vand.u32 4294901760, %v2168_v11 }
 0x281   :  { %v4073_v61 = vpop.f32.mrf.mxu0 }
 0x282   :  { %v1970_v23 = vadd.f32 %v1969_v12, %v1889_v54  ;;  %v2165_v12 = vld [vmem:[%s6161_s5 + $0x88] sm:$0xff] }
 0x288   :  { %v2143_v13 = vpop.f32.mrf.mxu1 }
 0x28a   :  { %v4130_v33 = vpop.f32.mrf.mxu1 }
 0x28b   :  { %v2153_v33 = vld [vmem:[%s6161_s5 + $0x28] sm:$0xff] }
 0x290   :  { %v2064_v40 = vpop.f32.mrf.mxu0 }
 0x291   :  { %v2065_v47 = vadd.f32 %v2064_v40, %v1970_v23  ;;  %v28_v23 = vld [vmem:[%s6163_s6] sm:$0x7] }
 0x292   :  { %v4111_v0 = vpop.f32.mrf.mxu0 }
 0x293   :  { %v2144_v36 = vadd.f32 %v2143_v13, %v2065_v47  ;;  %v2171_v47 = vld [vmem:[%s6161_s5 + $0xb8] sm:$0xff]  ;;  %v2156_v13 = vld [vmem:[%s6161_s5 + $0x40] sm:$0xff] }
 0x294   :  { %v5883_v49 = vand.u32 4294901760, %v2171_v47  ;;  %v5947_v44 = vand.u32 4294901760, %v2156_v13 }
 0x295   :  { %v2147_v19 = vmax.f32 %v2144_v36, 0.0 }
 0x296   :  { %v5902_v35 = vsub.f32 %v2171_v47, %v5883_v49 }
 0x297   :  { %v2189_v31 = vsel %vm1606_vm1, %v2147_v19, 0 }
 0x298   :  { %v5838_v34 = vand.u32 4294901760, %v2189_v31 }
 0x29a   :  { %v5841_v61 = vsub.f32 %v2189_v31, %v5838_v34  ;;  %2429 = vmatmul.mubr.f32.vlgmr.msra.gmra.mxu1 %v5838_v34 }
 0x29b   :  { %2559 = vmatpush1.msra.mxu1 %v5632_v56  ;;  %2620 = vmatprep.mubr.f32.mxu1 %v4248_v43 }
 0x29c   :  { %2561 = vmatprep.subr.mxu1 %v5640_v9  ;;  %v5848_v40 = vand.u32 4294901760, %v5841_v61 }
 0x29d   :  { %2563 = vmatpush1.msra.mxu1 %v5649_v28 }
 0x29e   :  { %2565 = vmatprep.subr.mxu1 %v5659_v51  ;;  %v2275_v19 = vsub.f32 %v5841_v61, %v5848_v40 }
 0x29f   :  { %2567 = vmatpush1.msra.mxu1 %v5669_v4 }
 0x2a0   :  { %2569 = vmatprep.subr.mxu1 %v5682_v32  ;;  %v5856_v0 = vand.u32 4294901760, %v2275_v19 }
 0x2a1   :  { %2571 = vmatpush1.msra.mxu1 %v5695_v48 }
 0x2a2   :  { %2573 = vmatprep.subr.mxu1 %v5727_v52  ;;  %2277 = vmatmul.mubr.f32.vlgmr.msra.gmra.mxu0 %v5856_v0 }
 0x2a3   :  { %2456 = vmatpush1.msra.mxu0 %v5647_v17  ;;  %2575 = vmatpush1.msra.mxu1 %v5736_v21 }
 0x2a4   :  { %2459 = vmatprep.subr.mxu0 %v5657_v37  ;;  %2577 = vmatprep.subr.mxu1 %v5747_v63 }
 0x2a5   :  { %2462 = vmatpush1.msra.mxu0 %v5667_v3  ;;  %2579 = vmatpush1.msra.mxu1 %v5759_v46  ;;  %v5965_v3 = vand.u32 4294901760, %v2153_v33 }
 0x2a6   :  { %2465 = vmatprep.subr.mxu0 %v5680_v26  ;;  %2581 = vmatprep.subr.mxu1 %v5769_v45  ;;  %v5978_v26 = vsub.f32 %v2156_v13, %v5947_v44 }
 0x2a7   :  { %2468 = vmatpush1.msra.mxu0 %v5693_v55  ;;  %2583 = vmatpush1.msra.mxu1 %v5779_v50 }
 0x2a8   :  { %2471 = vmatprep.subr.mxu0 %v5706_v57  ;;  %2585 = vmatprep.subr.mxu1 %v5789_v62 }
 0x2a9   :  { %2474 = vmatpush1.msra.mxu0 %v5717_v2  ;;  %2587 = vmatpush1.msra.mxu1 %v5799_v1 }
 0x2aa   :  { %2477 = vmatprep.subr.mxu0 %v5745_v24  ;;  %2624 = vmatmul.mubr.f32.vlgmr.msra.gmra.mxu1 %v5848_v40 }
 0x2ab   :  { %2767 = vmatprep.subr.mxu1 %v5627_v38  ;;  %2480 = vmatpush1.msra.mxu0 %v5757_v22  ;;  %v2162_v38 = vld [vmem:[%s6161_s5 + $0x70] sm:$0xff] }
 0x2ac   :  { %2769 = vmatpush1.msra.mxu1 %v5632_v56  ;;  %2483 = vmatprep.subr.mxu0 %v5767_v25  ;;  %v5904_v56 = vand.u32 4294901760, %v2165_v12  ;;  %v5913_v15 = vand.u32 4294901760, %v2162_v38  ;;  %v6333_v25 = vand.u32 4294901760, %v5797_v6 }
 0x2ad   :  { %2771 = vmatprep.subr.mxu1 %v5640_v9  ;;  %2486 = vmatpush1.msra.mxu0 %v5777_v10  ;;  %v5911_v9 = vsub.f32 %v2168_v11, %v5892_v27  ;;  %v6334_v10 = vand.u32 4294901760, %v5807_v18 }
 0x2ae   :  { %2773 = vmatpush1.msra.mxu1 %v5649_v28  ;;  %2489 = vmatprep.subr.mxu0 %v5787_v53  ;;  %v2159_v28 = vld [vmem:[%s6161_s5 + $0x58] sm:$0xff]  ;;  %v5939_v29 = vsub.f32 %v2162_v38, %v5913_v15 }
 0x2af   :  { %2775 = vmatprep.subr.mxu1 %v5659_v51  ;;  %2492 = vmatpush1.msra.mxu0 %v5797_v6  ;;  %v2940_v51 = vand.u32 4294901760, %v5902_v35 }
 0x2b0   :  { %2777 = vmatpush1.msra.mxu1 %v5669_v4  ;;  %2495 = vmatprep.subr.mxu0 %v5807_v18  ;;  %v5924_v4 = vsub.f32 %v2165_v12, %v5904_v56  ;;  %v2173_v18 = vlaneseq }
 0x2b1   :  { %2779 = vmatprep.subr.mxu1 %v5682_v32  ;;  %2498 = vmatpush1.msra.mxu0 %v5815_v5  ;;  %v5932_v32 = vand.u32 4294901760, %v2159_v28  ;;  %v2941_v17 = vsub.f32 %v5902_v35, %v2940_v51 }
 0x2b2   :  { %2531 = vmatprep.mubr.f32.mxu0 %v4248_v43  ;;  %2781 = vmatpush1.msra.mxu1 %v5695_v48  ;;  %v2947_v48 = vand.u32 4294901760, %v5911_v9 }
 0x2b3   :  { %2534 = vmatmul.mubr.f32.vlgmr.msra.gmra.mxu0 %v5841_v61  ;;  %2649 = vmatprep.subr.mxu0 %v2301_v7  ;;  %v2954_v7 = vand.u32 4294901760, %v5924_v4  ;;  %v5963_v37 = vsub.f32 %v2159_v28, %v5932_v32  ;;  %v2942_v55 = vand.u32 4294901760, %v2941_v17 }
 0x2b4   :  { %2783 = vmatprep.subr.mxu1 %v5727_v52  ;;  %2653 = vmatpush1.msra.mxu0 %v2307_v30  ;;  %v2150_v30 = vld [vmem:[%s6161_s5 + $0x10] sm:$0xff] }
 0x2b5   :  { %2785 = vmatpush1.msra.mxu1 %v5736_v21  ;;  %2657 = vmatprep.subr.mxu0 %v2313_v41  ;;  %v2948_v41 = vsub.f32 %v5911_v9, %v2947_v48  ;;  %v2968_v57 = vand.u32 4294901760, %v5963_v37 }
 0x2b6   :  { %2787 = vmatprep.subr.mxu1 %v5747_v63  ;;  %2661 = vmatpush1.msra.mxu0 %v2319_v16  ;;  %v2961_v16 = vand.u32 4294901760, %v5939_v29 }
 0x2b7   :  { %2789 = vmatpush1.msra.mxu1 %v5759_v46  ;;  %2665 = vmatprep.subr.mxu0 %v2325_v58  ;;  %v5980_v58 = vand.u32 4294901760, %v2150_v30  ;;  %v2949_v2 = vand.u32 4294901760, %v2948_v41  ;;  %v2969_v63 = vsub.f32 %v5963_v37, %v2968_v57  ;;  %v6332_v46 = vand.u32 4294901760, %v5787_v53 }
 0x2b8   :  { %2791 = vmatprep.subr.mxu1 %v5769_v45  ;;  %2669 = vmatpush1.msra.mxu0 %v2331_v39  ;;  %v2955_v39 = vsub.f32 %v5924_v4, %v2954_v7  ;;  %v2962_v52 = vsub.f32 %v5939_v29, %v2961_v16 }
 0x2b9   :  { %2793 = vmatpush1.msra.mxu1 %v5779_v50  ;;  %2673 = vmatprep.subr.mxu0 %v2337_v59  ;;  %v5992_v59 = vsub.f32 %v2153_v33, %v5965_v3  ;;  %v6005_v21 = vsub.f32 %v2150_v30, %v5980_v58  ;;  %v6335_v50 = vand.u32 4294901760, %v5815_v5  ;;  %v2174_v5 = vshrl.u32 %v2173_v18, 7 }
 0x2ba   :  { %2795 = vmatprep.subr.mxu1 %v5789_v62  ;;  %2677 = vmatpush1.msra.mxu0 %v2343_v42  ;;  %v2975_v42 = vand.u32 4294901760, %v5978_v26  ;;  %v2956_v24 = vand.u32 4294901760, %v2955_v39 }
 0x2bb   :  { %2797 = vmatpush1.msra.mxu1 %v5799_v1  ;;  %2830 = vmatprep.mubr.f32.mxu1 %v4248_v43  ;;  %v2982_v22 = vand.u32 4294901760, %v5992_v59  ;;  %v2175_v54 = vsub.s32 0, %v2174_v5  ;;  %v2179_v36 = vsub.s32 1, %v2174_v5 }
 0x2bc   :  { %2681 = vmatprep.subr.mxu0 %v2349_v20  ;;  %2832 = vmatmul.mubr.f32.vlgmr.msra.gmra.mxu1 %v5838_v34  ;;  %v2963_v20 = vand.u32 4294901760, %v2962_v52  ;;  %v2976_v45 = vsub.f32 %v5978_v26, %v2975_v42 }
 0x2bd   :  { %4150 = vmatprep.subr.mxu1 %v4248_v43  ;;  %2685 = vmatpush1.msra.mxu0 %v2355_v14  ;;  %v2989_v14 = vand.u32 4294901760, %v6005_v21  ;;  %v2983_v53 = vsub.f32 %v5992_v59, %v2982_v22 }
 0x2be   :  { %4151 = vmatpush3.msra.mxu1 %v2942_v55  ;;  %2689 = vmatprep.subr.mxu0 %v2361_v60  ;;  %v2970_v60 = vand.u32 4294901760, %v2969_v63  ;;  %v2977_v62 = vand.u32 4294901760, %v2976_v45 }
 0x2bf   :  { %4152 = vmatprep.subr.mxu1 %v4248_v43  ;;  %2693 = vmatpush1.msra.mxu0 %v2367_v8  ;;  %v2990_v8 = vsub.f32 %v6005_v21, %v2989_v14  ;;  %v2984_v6 = vand.u32 4294901760, %v2983_v53 }
 0x2c0   :  { %4153 = vmatpush3.msra.mxu1 %v2949_v2  ;;  %2697 = vmatprep.subr.mxu0 %v6332_v46 }
 0x2c1   :  { %4154 = vmatprep.subr.mxu1 %v4248_v43  ;;  %2701 = vmatpush1.msra.mxu0 %v6333_v25  ;;  %v2991_v1 = vand.u32 4294901760, %v2990_v8 }
 0x2c2   :  { %4155 = vmatpush3.msra.mxu1 %v2956_v24  ;;  %2705 = vmatprep.subr.mxu0 %v6334_v10 }
 0x2c3   :  { %4156 = vmatprep.subr.mxu1 %v4248_v43  ;;  %2709 = vmatpush1.msra.mxu0 %v6335_v50 }
 0x2c4   :  { %2742 = vmatprep.mubr.f32.mxu0 %v4248_v43  ;;  %4157 = vmatpush3.msra.mxu1 %v2963_v20 }
 0x2c5   :  { %2744 = vmatmul.mubr.f32.vlgmr.msra.gmra.mxu0 %v5838_v34  ;;  %4131 = vmatprep.subr.mxu0 %v4248_v43 }
 0x2c6   :  { %4158 = vmatprep.subr.mxu1 %v4248_v43  ;;  %4132 = vmatpush3.msra.mxu0 %v5883_v49 }
 0x2c7   :  { %4159 = vmatpush3.msra.mxu1 %v2970_v60  ;;  %4133 = vmatprep.subr.mxu0 %v4248_v43 }
 0x2c8   :  { %4160 = vmatprep.subr.mxu1 %v4248_v43  ;;  %4134 = vmatpush3.msra.mxu0 %v5892_v27 }
 0x2c9   :  { %4161 = vmatpush3.msra.mxu1 %v2977_v62  ;;  %4135 = vmatprep.subr.mxu0 %v4248_v43 }
 0x2ca   :  { %4162 = vmatprep.subr.mxu1 %v4248_v43  ;;  %4136 = vmatpush3.msra.mxu0 %v5904_v56 }
 0x2cb   :  { %4163 = vmatpush3.msra.mxu1 %v2984_v6  ;;  %4137 = vmatprep.subr.mxu0 %v4248_v43 }
 0x2cc   :  { %4164 = vmatprep.subr.mxu1 %v4248_v43  ;;  %4138 = vmatpush3.msra.mxu0 %v5913_v15 }
 0x2cd   :  { %4165 = vmatpush3.msra.mxu1 %v2991_v1  ;;  %4166 = vmatprep.mubr.msk.f32.mxu1 %vm4249_vm0, %v4248_v43 }
 0x2ce   :  { %4139 = vmatprep.subr.mxu0 %v4248_v43  ;;  %4167 = vmatmul.mubr.f32.vlgmr.msra.gmra.mxu1 %v5838_v34 }
 0x2cf   :  { %4188 = vmatprep.subr.mxu1 %v4248_v43  ;;  %4140 = vmatpush3.msra.mxu0 %v5932_v32 }
 0x2d0   :  { %4189 = vmatpush3.msra.mxu1 %v5883_v49  ;;  %4141 = vmatprep.subr.mxu0 %v4248_v43 }
 0x2d1   :  { %4190 = vmatprep.subr.mxu1 %v4248_v43  ;;  %4142 = vmatpush3.msra.mxu0 %v5947_v44 }
 0x2d2   :  { %4191 = vmatpush3.msra.mxu1 %v5892_v27  ;;  %4143 = vmatprep.subr.mxu0 %v4248_v43 }
 0x2d3   :  { %4192 = vmatprep.subr.mxu1 %v4248_v43  ;;  %4144 = vmatpush3.msra.mxu0 %v5965_v3 }
 0x2d4   :  { %4193 = vmatpush3.msra.mxu1 %v5904_v56  ;;  %4145 = vmatprep.subr.mxu0 %v4248_v43 }
 0x2d5   :  { %4194 = vmatprep.subr.mxu1 %v4248_v43  ;;  %4146 = vmatpush3.msra.mxu0 %v5980_v58 }
 0x2d6   :  { %4147 = vmatprep.mubr.msk.f32.mxu0 %vm4249_vm0, %v4248_v43  ;;  %4195 = vmatpush3.msra.mxu1 %v5913_v15 }
 0x2d7   :  { %4148 = vmatmul.mubr.f32.vlgmr.msra.gmra.mxu0 %v5856_v0  ;;  %4169 = vmatprep.subr.mxu0 %v4248_v43 }
 0x2d8   :  { %4196 = vmatprep.subr.mxu1 %v4248_v43  ;;  %4170 = vmatpush3.msra.mxu0 %v5902_v35 }
 0x2d9   :  { %4197 = vmatpush3.msra.mxu1 %v5932_v32  ;;  %4171 = vmatprep.subr.mxu0 %v4248_v43 }
 0x2da   :  { %4198 = vmatprep.subr.mxu1 %v4248_v43  ;;  %4172 = vmatpush3.msra.mxu0 %v5911_v9 }
 0x2db   :  { %4199 = vmatpush3.msra.mxu1 %v5947_v44  ;;  %4173 = vmatprep.subr.mxu0 %v4248_v43 }
 0x2dc   :  { %4200 = vmatprep.subr.mxu1 %v4248_v43  ;;  %4174 = vmatpush3.msra.mxu0 %v5924_v4 }
 0x2dd   :  { %4201 = vmatpush3.msra.mxu1 %v5965_v3  ;;  %4175 = vmatprep.subr.mxu0 %v4248_v43 }
 0x2de   :  { %4202 = vmatprep.subr.mxu1 %v4248_v43  ;;  %4176 = vmatpush3.msra.mxu0 %v5939_v29 }
 0x2df   :  { %4203 = vmatpush3.msra.mxu1 %v5980_v58  ;;  %4204 = vmatprep.mubr.msk.f32.mxu1 %vm4249_vm0, %v4248_v43 }
 0x2e0   :  { %4177 = vmatprep.subr.mxu0 %v4248_v43  ;;  %4205 = vmatmul.mubr.f32.vlgmr.msra.gmra.mxu1 %v5848_v40  ;;  %v2180_v40 = vrot.slane %v28_v23, %v2179_v36 }
 0x2e1   :  { %4226 = vmatprep.subr.mxu1 %v4248_v43  ;;  %4178 = vmatpush3.msra.mxu0 %v5963_v37 }
 0x2e2   :  { %4227 = vmatpush3.msra.mxu1 %v5883_v49  ;;  %4179 = vmatprep.subr.mxu0 %v4248_v43 }
 0x2e3   :  { %4228 = vmatprep.subr.mxu1 %v4248_v43  ;;  %4180 = vmatpush3.msra.mxu0 %v5978_v26  ;;  %v2183_v26 = vsub.s32 2, %v2174_v5 }
 0x2e4   :  { %4229 = vmatpush3.msra.mxu1 %v5892_v27  ;;  %4181 = vmatprep.subr.mxu0 %v4248_v43 }
 0x2e5   :  { %4230 = vmatprep.subr.mxu1 %v4248_v43  ;;  %4182 = vmatpush3.msra.mxu0 %v5992_v59  ;;  %v2184_v55 = vrot.slane %v28_v23, %v2183_v26 }
 0x2e6   :  { %4231 = vmatpush3.msra.mxu1 %v5904_v56  ;;  %4183 = vmatprep.subr.mxu0 %v4248_v43 }
 0x2e7   :  { %4232 = vmatprep.subr.mxu1 %v4248_v43  ;;  %4184 = vmatpush3.msra.mxu0 %v6005_v21 }
 0x2e8   :  { %4185 = vmatprep.mubr.msk.f32.mxu0 %vm4249_vm0, %v4248_v43  ;;  %4233 = vmatpush3.msra.mxu1 %v5913_v15 }
 0x2e9   :  { %4186 = vmatmul.mubr.f32.vlgmr.msra.gmra.mxu0 %v5841_v61  ;;  %4207 = vmatprep.subr.mxu0 %v4248_v43  ;;  %v2176_v61 = vrot.slane %v28_v23, %v2175_v54 }
 0x2ea   :  { %4234 = vmatprep.subr.mxu1 %v4248_v43  ;;  %4208 = vmatpush3.msra.mxu0 %v2940_v51 }
 0x2eb   :  { %4235 = vmatpush3.msra.mxu1 %v5932_v32  ;;  %4209 = vmatprep.subr.mxu0 %v4248_v43 }
 0x2ec   :  { %4236 = vmatprep.subr.mxu1 %v4248_v43  ;;  %4210 = vmatpush3.msra.mxu0 %v2947_v48 }
 0x2ed   :  { %4237 = vmatpush3.msra.mxu1 %v5947_v44  ;;  %4211 = vmatprep.subr.mxu0 %v4248_v43 }
 0x2ee   :  { %4238 = vmatprep.subr.mxu1 %v4248_v43  ;;  %4212 = vmatpush3.msra.mxu0 %v2954_v7 }
 0x2ef   :  { %4239 = vmatpush3.msra.mxu1 %v5965_v3  ;;  %4213 = vmatprep.subr.mxu0 %v4248_v43 }
 0x2f0   :  { %4240 = vmatprep.subr.mxu1 %v4248_v43  ;;  %4214 = vmatpush3.msra.mxu0 %v2961_v16 }
 0x2f1   :  { %4241 = vmatpush3.msra.mxu1 %v5980_v58  ;;  %4242 = vmatprep.mubr.msk.f32.mxu1 %vm4249_vm0, %v4248_v43 }
 0x2f2   :  { %4215 = vmatprep.subr.mxu0 %v4248_v43  ;;  %4243 = vmatmul.mubr.f32.vlgmr.msra.gmra.mxu1 %v5838_v34 }
 0x2f3   :  { %4216 = vmatpush3.msra.mxu0 %v2968_v57  ;;  %4223 = vmatprep.mubr.msk.f32.mxu0 %vm4249_vm0, %v4248_v43 }
 0x2f4   :  { %4217 = vmatprep.subr.mxu0 %v4248_v43 }
 0x2f5   :  { %4218 = vmatpush3.msra.mxu0 %v2975_v42 }
 0x2f6   :  { %4219 = vmatprep.subr.mxu0 %v4248_v43 }
 0x2f7   :  { %4220 = vmatpush3.msra.mxu0 %v2982_v22 }
 0x2f8   :  { %4221 = vmatprep.subr.mxu0 %v4248_v43 }
 0x2f9   :  { %4222 = vmatpush3.msra.mxu0 %v2989_v14 }
 0x2fa   :  { %4224 = vmatmul.mubr.f32.vlgmr.msra.gmra.mxu0 %v5838_v34 }
 0x35a   :  { %v2430_v19 = vpop.f32.mrf.mxu1 }
 0x35c   :  { %v2432_v49 = vpop.f32.mrf.mxu1 }
 0x362   :  { %v2278_v31 = vpop.f32.mrf.mxu0 }
 0x363   :  { %v2279_v47 = vadd.f32 %v2278_v31, %v2176_v61 }
 0x364   :  { %v2280_v0 = vpop.f32.mrf.mxu0 }
 0x365   :  { %v2281_v11 = vadd.f32 %v2280_v0, %v2180_v40  ;;  %v2431_v12 = vadd.f32 %v2430_v19, %v2279_v47 }
 0x367   :  { %v2433_v35 = vadd.f32 %v2432_v49, %v2281_v11 }
 0x36a   :  { %v2625_v27 = vpop.f32.mrf.mxu1 }
 0x36c   :  { %v2627_v9 = vpop.f32.mrf.mxu1 }
 0x373   :  { %v2535_v43 = vpop.f32.mrf.mxu0 }
 0x374   :  { %v2536_v38 = vadd.f32 %v2535_v43, %v2431_v12 }
 0x375   :  { %v2537_v34 = vpop.f32.mrf.mxu0 }
 0x376   :  { %v2538_v56 = vadd.f32 %v2537_v34, %v2433_v35  ;;  %v2626_v15 = vadd.f32 %v2625_v27, %v2536_v38 }
 0x378   :  { %v2628_v13 = vadd.f32 %v2627_v9, %v2538_v56 }
 0x37c   :  { %v2833_v28 = vpop.f32.mrf.mxu1 }
 0x37e   :  { %v2835_v29 = vpop.f32.mrf.mxu1 }
 0x385   :  { %v2745_v51 = vpop.f32.mrf.mxu0 }
 0x386   :  { %v2746_v4 = vadd.f32 %v2745_v51, %v2626_v15 }
 0x387   :  { %v2747_v32 = vpop.f32.mrf.mxu0 }
 0x388   :  { %v2748_v48 = vadd.f32 %v2747_v32, %v2628_v13  ;;  %v2834_v33 = vadd.f32 %v2833_v28, %v2746_v4 }
 0x38a   :  { %v2836_v44 = vadd.f32 %v2835_v29, %v2748_v48 }
 0x38c   :  { %v3377_v17 = vcombine.low %v2834_v33, %v2836_v44 }
 0x38e   :  { %v3028_v7 = vpop.f32.mrf.mxu1  ;;  %3379 = vst [vmem:[%s6164_s7] sm:$0xff] %v3377_v17 }
 0x390   :  { %v4168_v30 = vpop.f32.mrf.mxu1 }
 0x397   :  { %v2917_v37 = vpop.f32.mrf.mxu0 }
 0x398   :  { %v2918_v57 = vadd.f32 %v2917_v37, %v2184_v55 }
 0x399   :  { %v4149_v3 = vpop.f32.mrf.mxu0 }
 0x39a   :  { %v3029_v2 = vadd.f32 %v3028_v7, %v2918_v57 }
 0x3a0   :  { %v3197_v41 = vpop.f32.mrf.mxu1 }
 0x3a2   :  { %v4206_v16 = vpop.f32.mrf.mxu1 }
 0x3a9   :  { %v3116_v58 = vpop.f32.mrf.mxu0 }
 0x3aa   :  { %v3117_v42 = vadd.f32 %v3116_v58, %v3029_v2 }
 0x3ab   :  { %v4187_v39 = vpop.f32.mrf.mxu0 }
 0x3ac   :  { %v3198_v21 = vadd.f32 %v3197_v41, %v3117_v42 }
 0x3b2   :  { %v3371_v59 = vpop.f32.mrf.mxu1 }
 0x3b4   :  { %v4244_v52 = vpop.f32.mrf.mxu1 }
 0x3ba   :  { %v3292_v24 = vpop.f32.mrf.mxu0 }
 0x3bb   :  { %v3293_v63 = vadd.f32 %v3292_v24, %v3198_v21 }
 0x3bc   :  { %v4225_v22 = vpop.f32.mrf.mxu0 }
 0x3bd   :  { %v3372_v46 = vadd.f32 %v3371_v59, %v3293_v63 }
 0x3bf   :  { %3380 = vst [vmem:[%s6164_s7 + $0x8] sm:$0xf] %v3372_v46 }

</bundles_post_ra>
